<compile_context>
chip_gen: v6e
topology: v6e:2x2x1
jax: 0.10.0
libtpu: 0.0.40
codegen_flags: <defaults>
</compile_context>

<pallas_src>
import numpy as np

import jax
import jax.numpy as jnp
from jax.experimental import pallas as pl
from jax.experimental.pallas import tpu as pltpu

# --- problem sizes implied by the module -------------------------------------
N_ANT = 64                       # N (DFT size / antennas)
M_PIL = 20                       # M (pilots)
IN_SIZE = 2 * M_PIL              # 40
OUT_SIZE = 2 * N_ANT             # 128
HIDDEN = int(M_PIL * N_ANT / 2)  # 640
TB_MAX = 1024                    # max batch tile (footprint ~12 MiB VMEM)


def _ceil_div(a, b):
    return -(-a // b)


def _round_up(a, m):
    return _ceil_div(a, m) * m


# --- fused kernel: 3-layer MLP + in-kernel A_tilde + physics Rx layer ---------
def _fused_kernel(betas_ref, x_ref, w0_ref, b0_ref, w1_ref, b1_ref,
                  w2_ref, b2_ref, s_ref, frT_ref, fiT_ref, r_ref, xth_ref):
    tb3 = betas_ref[0]
    tb5 = betas_ref[1]
    rb3 = betas_ref[2]
    rb5 = betas_ref[3]

    # ---- 3-layer MLP: bf16 MXU matmuls, f32 accumulation + f32 epilogue ----
    x = x_ref[...]                                            # (TB, 40) bf16
    h = jnp.dot(x, w0_ref[...],
                preferred_element_type=jnp.float32) + b0_ref[...]
    h = jnp.maximum(h, 0.0)                                   # dropout = identity (eval)
    h = jnp.dot(h.astype(jnp.bfloat16), w1_ref[...],
                preferred_element_type=jnp.float32) + b1_ref[...]
    h = jnp.maximum(h, 0.0)
    xth = jnp.dot(h.astype(jnp.bfloat16), w2_ref[...],
                  preferred_element_type=jnp.float32) + b2_ref[...]
    xth_ref[...] = xth.astype(xth_ref.dtype)                  # x_tilde_hat (TB, 128)

    # ---- A_tilde (batch independent, tiny): rebuilt per grid step ----------
    # A_tilde = cat([[Ar, -Ai], [Ai, Ar]], 0).T == [[Ar.T, Ai.T], [-Ai.T, Ar.T]]
    # with Ar = fS_T @ F_real, Ai = fS_T @ F_imag,
    #      fS_T = S_T*(1 + tb3*S_T^2 + tb5*S_T^4)  (so fS_T.T == poly(S) elementwise).
    s = s_ref[...]                                            # (N, M) f32
    s2 = s * s
    fs = s * (1.0 + tb3 * s2 + tb5 * s2 * s2)                 # == fS_T.T, (N, M)
    ArT = jnp.dot(frT_ref[...], fs, preferred_element_type=jnp.float32)   # (N, M)
    AiT = jnp.dot(fiT_ref[...], fs, preferred_element_type=jnp.float32)   # (N, M)
    top = jnp.concatenate([ArT, AiT], axis=1)                 # (N, 2M)
    bot = jnp.concatenate([-AiT, ArT], axis=1)                # (N, 2M)
    a_tilde = jnp.concatenate([top, bot], axis=0)             # (2N, 2M) f32

    # ---- physics Rx layer: one lane-dense (TB,128)@(128,40) matmul, no sqrt -
    y = jnp.dot(xth, a_tilde, preferred_element_type=jnp.float32)         # (TB, 2M)
    yr = y[:, :M_PIL]
    yi = y[:, M_PIL:]
    amp2 = yr * yr + yi * yi                                  # y_amp^2 (sqrt dropped)
    ramp = 1.0 + rb3 * amp2 + rb5 * amp2 * amp2
    r_ref[...] = (jnp.concatenate([ramp, ramp], axis=1) * y).astype(r_ref.dtype)


@jax.jit
def net_forward(x, params):
    B = x.shape[0]

    # Balanced batch tiles: >=2 grid steps so both v7x TensorCores get work,
    # each tile a multiple of 16 sublanes (bf16-native), no padding to TB_MAX.
    num_tiles = max(2, _ceil_div(B, TB_MAX))
    tb = _round_up(_ceil_div(B, num_tiles), 16)
    Bp = num_tiles * tb

    xb = x.astype(jnp.bfloat16)                               # ship bf16, 40 lanes
    if Bp != B:
        xb = jnp.pad(xb, ((0, Bp - B), (0, 0)))

    flops = (2 * Bp * (IN_SIZE * HIDDEN + HIDDEN * HIDDEN + HIDDEN * OUT_SIZE
                       + OUT_SIZE * IN_SIZE)
             + num_tiles * 4 * N_ANT * N_ANT * M_PIL)
    bytes_accessed = (Bp * IN_SIZE * 2                                    # x bf16
                      + (IN_SIZE * HIDDEN + HIDDEN * HIDDEN
                         + HIDDEN * OUT_SIZE) * 2                         # weights bf16
                      + (2 * HIDDEN + OUT_SIZE) * 4                       # biases f32
                      + (N_ANT * M_PIL + 2 * N_ANT * N_ANT) * 4           # S, F.T's
                      + Bp * (IN_SIZE + OUT_SIZE) * 4)                    # outputs f32

    r, xth = pl.pallas_call(
        _fused_kernel,
        out_shape=(jax.ShapeDtypeStruct((Bp, 2 * M_PIL), jnp.float32),
                   jax.ShapeDtypeStruct((Bp, 2 * N_ANT), jnp.float32)),
        grid=(num_tiles,),
        in_specs=[
            pl.BlockSpec(memory_space=pltpu.SMEM),                    # betas (4,)
            pl.BlockSpec((tb, IN_SIZE), lambda i: (i, 0)),            # x bf16 (B, 40)
            pl.BlockSpec((IN_SIZE, HIDDEN), lambda i: (0, 0)),        # W0 bf16 (40, 640)
            pl.BlockSpec((1, HIDDEN), lambda i: (0, 0)),              # b0
            pl.BlockSpec((HIDDEN, HIDDEN), lambda i: (0, 0)),         # W1 bf16
            pl.BlockSpec((1, HIDDEN), lambda i: (0, 0)),              # b1
            pl.BlockSpec((HIDDEN, OUT_SIZE), lambda i: (0, 0)),       # W2 bf16
            pl.BlockSpec((1, OUT_SIZE), lambda i: (0, 0)),            # b2
            pl.BlockSpec((N_ANT, M_PIL), lambda i: (0, 0)),           # S (N, M)
            pl.BlockSpec((N_ANT, N_ANT), lambda i: (0, 0)),           # F_real.T
            pl.BlockSpec((N_ANT, N_ANT), lambda i: (0, 0)),           # F_imag.T
        ],
        out_specs=(pl.BlockSpec((tb, 2 * M_PIL), lambda i: (i, 0)),   # r_tilde_hat
                   pl.BlockSpec((tb, 2 * N_ANT), lambda i: (i, 0))),  # x_tilde_hat
        compiler_params=pltpu.CompilerParams(
            dimension_semantics=("parallel",),
            vmem_limit_bytes=48 * 1024 * 1024),
        cost_estimate=pl.CostEstimate(flops=flops, transcendentals=0,
                                      bytes_accessed=bytes_accessed),
    )(params["betas"], xb,
      params["W0"], params["b0"].reshape(1, -1),
      params["W1"], params["b1"].reshape(1, -1),
      params["W2"], params["b2"].reshape(1, -1),
      params["S"], params["FrT"], params["FiT"])

    if Bp != B:
        r = r[:B]
        xth = xth[:B]
    return r, xth


# --- pure-JAX reference (matched bf16 MXU matmul precision) --------------------
def net_forward_ref(x, params):
    def mm(a, w_bf16):  # emulate bf16 x bf16 MXU matmul with f32 accumulation
        return jnp.dot(a.astype(jnp.bfloat16).astype(jnp.float32),
                       w_bf16.astype(jnp.bfloat16).astype(jnp.float32))

    h = jnp.maximum(mm(x, params["W0"]) + params["b0"], 0.0)
    h = jnp.maximum(mm(h, params["W1"]) + params["b1"], 0.0)
    xth = mm(h, params["W2"]) + params["b2"]

    tb3, tb5, rb3, rb5 = params["betas"]
    st = params["S"].T                                        # S_T (M, N)
    fS = st * (1.0 + tb3 * st ** 2 + tb5 * st ** 4)
    Ar = fS @ params["F_real"]
    Ai = fS @ params["F_imag"]
    row1 = jnp.concatenate([Ar, -Ai], axis=1)
    row2 = jnp.concatenate([Ai, Ar], axis=1)
    A_tilde = jnp.concatenate([row1, row2], axis=0).T
    y = xth @ A_tilde
    yr, yi = y[:, :M_PIL], y[:, M_PIL:]
    y_amp = jnp.sqrt(yr ** 2 + yi ** 2)
    r_amp = 1.0 + rb3 * y_amp ** 2 + rb5 * y_amp ** 4
    r = jnp.concatenate([r_amp, r_amp], axis=1) * y
    return r, xth


# --- deterministic parameter / constant construction ---------------------------
def build_params(key):
    params = {}
    keys = jax.random.split(key, 7)
    shapes = [(IN_SIZE, HIDDEN), (HIDDEN, HIDDEN), (HIDDEN, OUT_SIZE)]
    for i, (fan_in, fan_out) in enumerate(shapes):
        bound = 1.0 / np.sqrt(fan_in)
        W = jax.random.uniform(keys[2 * i], (fan_in, fan_out), jnp.float32, -bound, bound)
        b = jax.random.uniform(keys[2 * i + 1], (fan_out,), jnp.float32, -bound, bound)
        params[f"W{i}"] = W.astype(jnp.bfloat16)   # MXU-native storage
        params[f"b{i}"] = b

    # [Txbeta3, Txbeta5, Rxbeta3, Rxbeta5] — module initializes these to 0.0*randn;
    # small nonzero values are used so the polynomial branches are exercised.
    params["betas"] = jnp.array([3e-3, -5e-4, 2e-3, -1e-4], jnp.float32)

    # DFT matrix F (N x N); transposes precomputed once (batch independent).
    n = np.arange(N_ANT)
    Fc = np.exp(-2j * np.pi * np.outer(n, n) / N_ANT)
    params["F_real"] = jnp.asarray(np.real(Fc), jnp.float32)
    params["F_imag"] = jnp.asarray(np.imag(Fc), jnp.float32)
    params["FrT"] = jnp.asarray(np.ascontiguousarray(np.real(Fc).T), jnp.float32)
    params["FiT"] = jnp.asarray(np.ascontiguousarray(np.imag(Fc).T), jnp.float32)

    # TODO(synk): the real pilot matrix S comes from 'S64.npy' (not available);
    # use a deterministic synthetic real-valued pilot matrix of the same shape.
    params["S"] = jax.random.normal(keys[-1], (N_ANT, M_PIL), jnp.float32)  # (N, M)
    return params


if __name__ == "__main__":
    key = jax.random.PRNGKey(0)
    k_params, k_x = jax.random.split(key)
    params = build_params(k_params)

    B = 8  # small batch
    x = jax.random.normal(k_x, (B, IN_SIZE), jnp.float32)  # r_tilde input: (B, 2M)

    r_tilde_hat, x_tilde_hat = net_forward(x, params)
    jax.block_until_ready((r_tilde_hat, x_tilde_hat))

    r_ref, x_ref_out = net_forward_ref(x, params)
    assert r_tilde_hat.shape == (B, 2 * M_PIL)
    assert x_tilde_hat.shape == (B, 2 * N_ANT)
    np.testing.assert_allclose(np.asarray(x_tilde_hat), np.asarray(x_ref_out),
                               rtol=1e-3, atol=1e-3)
    np.testing.assert_allclose(np.asarray(r_tilde_hat), np.asarray(r_ref),
                               rtol=1e-3, atol=1e-3)
    print("KERNEL_OK")
</pallas_src>

<mosaic_0001>
module attributes {stable_mosaic.version = 11 : i64} {
  func.func @_fused_kernel(%arg0: i32, %arg1: memref<4xf32, #tpu.memory_space<smem>>, %arg2: memref<16x40xbf16, #tpu.memory_space<vmem>>, %arg3: memref<40x640xbf16, #tpu.memory_space<vmem>>, %arg4: memref<1x640xf32, #tpu.memory_space<vmem>>, %arg5: memref<640x640xbf16, #tpu.memory_space<vmem>>, %arg6: memref<1x640xf32, #tpu.memory_space<vmem>>, %arg7: memref<640x128xbf16, #tpu.memory_space<vmem>>, %arg8: memref<1x128xf32, #tpu.memory_space<vmem>>, %arg9: memref<64x20xf32, #tpu.memory_space<vmem>>, %arg10: memref<64x64xf32, #tpu.memory_space<vmem>>, %arg11: memref<64x64xf32, #tpu.memory_space<vmem>>, %arg12: memref<16x40xf32, #tpu.memory_space<vmem>>, %arg13: memref<16x128xf32, #tpu.memory_space<vmem>>) attributes {dimension_semantics = [#tpu.dimension_semantics<parallel>], iteration_bounds = array<i64: 2>, scalar_prefetch = 0 : i64, scratch_operands = 0 : i64, tpu.core_type = #tpu.core_type<tc>, window_params = [{transform_indices = @transform_0, window_bounds = array<i64: 4>}, {transform_indices = @transform_1, window_bounds = array<i64: 16, 40>}, {pipeline_mode = #tpu.pipeline_mode<synchronous>, transform_indices = @transform_2, window_bounds = array<i64: 40, 640>}, {pipeline_mode = #tpu.pipeline_mode<synchronous>, transform_indices = @transform_3, window_bounds = array<i64: 1, 640>}, {pipeline_mode = #tpu.pipeline_mode<synchronous>, transform_indices = @transform_4, window_bounds = array<i64: 640, 640>}, {pipeline_mode = #tpu.pipeline_mode<synchronous>, transform_indices = @transform_5, window_bounds = array<i64: 1, 640>}, {pipeline_mode = #tpu.pipeline_mode<synchronous>, transform_indices = @transform_6, window_bounds = array<i64: 640, 128>}, {pipeline_mode = #tpu.pipeline_mode<synchronous>, transform_indices = @transform_7, window_bounds = array<i64: 1, 128>}, {pipeline_mode = #tpu.pipeline_mode<synchronous>, transform_indices = @transform_8, window_bounds = array<i64: 64, 20>}, {pipeline_mode = #tpu.pipeline_mode<synchronous>, transform_indices = @transform_9, window_bounds = array<i64: 64, 64>}, {pipeline_mode = #tpu.pipeline_mode<synchronous>, transform_indices = @transform_10, window_bounds = array<i64: 64, 64>}, {transform_indices = @transform_11, window_bounds = array<i64: 16, 40>}, {transform_indices = @transform_12, window_bounds = array<i64: 16, 128>}]} {
    %c0 = arith.constant 0 : index
    %0 = memref.load %arg1[%c0] : memref<4xf32, #tpu.memory_space<smem>>
    %c1 = arith.constant 1 : index
    %1 = memref.load %arg1[%c1] : memref<4xf32, #tpu.memory_space<smem>>
    %c2 = arith.constant 2 : index
    %2 = memref.load %arg1[%c2] : memref<4xf32, #tpu.memory_space<smem>>
    %c3 = arith.constant 3 : index
    %3 = memref.load %arg1[%c3] : memref<4xf32, #tpu.memory_space<smem>>
    %c0_0 = arith.constant 0 : index
    %c0_1 = arith.constant 0 : index
    %4 = vector.load %arg2[%c0_0, %c0_1] : memref<16x40xbf16, #tpu.memory_space<vmem>>, vector<16x40xbf16>
    %c0_2 = arith.constant 0 : index
    %c0_3 = arith.constant 0 : index
    %5 = vector.load %arg3[%c0_2, %c0_3] : memref<40x640xbf16, #tpu.memory_space<vmem>>, vector<40x640xbf16>
    %cst = arith.constant dense<0.000000e+00> : vector<16x640xf32>
    %6 = tpu.matmul %4, %5, %cst {dimension_numbers = #tpu.dot_dimension_numbers<[1], [0], [0], [1], [0, 0, 1, 1], [], []>} : vector<16x40xbf16>, vector<40x640xbf16>, vector<16x640xf32> -> vector<16x640xf32>
    %c0_4 = arith.constant 0 : index
    %c0_5 = arith.constant 0 : index
    %7 = vector.load %arg4[%c0_4, %c0_5] : memref<1x640xf32, #tpu.memory_space<vmem>>, vector<1x640xf32>
    %8 = vector.broadcast %7 : vector<1x640xf32> to vector<16x640xf32>
    %9 = arith.addf %6, %8 : vector<16x640xf32>
    %cst_6 = arith.constant 0.000000e+00 : f32
    %10 = vector.broadcast %cst_6 : f32 to vector<16x640xf32>
    %11 = arith.maximumf %9, %10 : vector<16x640xf32>
    %12 = arith.truncf %11 : vector<16x640xf32> to vector<16x640xbf16>
    %c0_7 = arith.constant 0 : index
    %c0_8 = arith.constant 0 : index
    %13 = vector.load %arg5[%c0_7, %c0_8] : memref<640x640xbf16, #tpu.memory_space<vmem>>, vector<640x640xbf16>
    %cst_9 = arith.constant dense<0.000000e+00> : vector<16x640xf32>
    %14 = tpu.matmul %12, %13, %cst_9 {dimension_numbers = #tpu.dot_dimension_numbers<[1], [0], [0], [1], [0, 0, 1, 1], [], []>} : vector<16x640xbf16>, vector<640x640xbf16>, vector<16x640xf32> -> vector<16x640xf32>
    %c0_10 = arith.constant 0 : index
    %c0_11 = arith.constant 0 : index
    %15 = vector.load %arg6[%c0_10, %c0_11] : memref<1x640xf32, #tpu.memory_space<vmem>>, vector<1x640xf32>
    %16 = vector.broadcast %15 : vector<1x640xf32> to vector<16x640xf32>
    %17 = arith.addf %14, %16 : vector<16x640xf32>
    %cst_12 = arith.constant 0.000000e+00 : f32
    %18 = vector.broadcast %cst_12 : f32 to vector<16x640xf32>
    %19 = arith.maximumf %17, %18 : vector<16x640xf32>
    %20 = arith.truncf %19 : vector<16x640xf32> to vector<16x640xbf16>
    %c0_13 = arith.constant 0 : index
    %c0_14 = arith.constant 0 : index
    %21 = vector.load %arg7[%c0_13, %c0_14] : memref<640x128xbf16, #tpu.memory_space<vmem>>, vector<640x128xbf16>
    %cst_15 = arith.constant dense<0.000000e+00> : vector<16x128xf32>
    %22 = tpu.matmul %20, %21, %cst_15 {dimension_numbers = #tpu.dot_dimension_numbers<[1], [0], [0], [1], [0, 0, 1, 1], [], []>} : vector<16x640xbf16>, vector<640x128xbf16>, vector<16x128xf32> -> vector<16x128xf32>
    %c0_16 = arith.constant 0 : index
    %c0_17 = arith.constant 0 : index
    %23 = vector.load %arg8[%c0_16, %c0_17] : memref<1x128xf32, #tpu.memory_space<vmem>>, vector<1x128xf32>
    %24 = vector.broadcast %23 : vector<1x128xf32> to vector<16x128xf32>
    %25 = arith.addf %22, %24 : vector<16x128xf32>
    %c0_18 = arith.constant 0 : index
    %c0_19 = arith.constant 0 : index
    %26 = vector.load %arg13[%c0_18, %c0_19] : memref<16x128xf32, #tpu.memory_space<vmem>>, vector<16x128xf32>
    tpu.vector_store %arg13[%c0_18, %c0_19], %25 {strides = array<i32>} : memref<16x128xf32, #tpu.memory_space<vmem>>, vector<16x128xf32>,
    %c0_20 = arith.constant 0 : index
    %c0_21 = arith.constant 0 : index
    %27 = vector.load %arg9[%c0_20, %c0_21] : memref<64x20xf32, #tpu.memory_space<vmem>>, vector<64x20xf32>
    %28 = arith.mulf %27, %27 : vector<64x20xf32>
    %29 = vector.broadcast %0 : f32 to vector<64x20xf32>
    %30 = arith.mulf %29, %28 : vector<64x20xf32>
    %cst_22 = arith.constant 1.000000e+00 : f32
    %31 = vector.broadcast %cst_22 : f32 to vector<64x20xf32>
    %32 = arith.addf %31, %30 : vector<64x20xf32>
    %33 = vector.broadcast %1 : f32 to vector<64x20xf32>
    %34 = arith.mulf %33, %28 : vector<64x20xf32>
    %35 = arith.mulf %34, %28 : vector<64x20xf32>
    %36 = arith.addf %32, %35 : vector<64x20xf32>
    %37 = arith.mulf %27, %36 : vector<64x20xf32>
    %c0_23 = arith.constant 0 : index
    %c0_24 = arith.constant 0 : index
    %38 = vector.load %arg10[%c0_23, %c0_24] : memref<64x64xf32, #tpu.memory_space<vmem>>, vector<64x64xf32>
    %cst_25 = arith.constant dense<0.000000e+00> : vector<64x20xf32>
    %39 = tpu.matmul %38, %37, %cst_25 {dimension_numbers = #tpu.dot_dimension_numbers<[1], [0], [0], [1], [0, 0, 1, 1], [], []>} : vector<64x64xf32>, vector<64x20xf32>, vector<64x20xf32> -> vector<64x20xf32>
    %c0_26 = arith.constant 0 : index
    %c0_27 = arith.constant 0 : index
    %40 = vector.load %arg11[%c0_26, %c0_27] : memref<64x64xf32, #tpu.memory_space<vmem>>, vector<64x64xf32>
    %cst_28 = arith.constant dense<0.000000e+00> : vector<64x20xf32>
    %41 = tpu.matmul %40, %37, %cst_28 {dimension_numbers = #tpu.dot_dimension_numbers<[1], [0], [0], [1], [0, 0, 1, 1], [], []>} : vector<64x64xf32>, vector<64x20xf32>, vector<64x20xf32> -> vector<64x20xf32>
    %42 = tpu.concatenate %39, %41 in 1 : vector<64x20xf32>, vector<64x20xf32> -> vector<64x40xf32>
    %cst_29 = arith.constant 0.000000e+00 : f32
    %43 = vector.broadcast %cst_29 : f32 to vector<64x20xf32>
    %44 = arith.subf %43, %41 : vector<64x20xf32>
    %45 = tpu.concatenate %44, %39 in 1 : vector<64x20xf32>, vector<64x20xf32> -> vector<64x40xf32>
    %46 = tpu.concatenate %42, %45 in 0 : vector<64x40xf32>, vector<64x40xf32> -> vector<128x40xf32>
    %cst_30 = arith.constant dense<0.000000e+00> : vector<16x40xf32>
    %47 = tpu.matmul %25, %46, %cst_30 {dimension_numbers = #tpu.dot_dimension_numbers<[1], [0], [0], [1], [0, 0, 1, 1], [], []>} : vector<16x128xf32>, vector<128x40xf32>, vector<16x40xf32> -> vector<16x40xf32>
    %48 = vector.extract_strided_slice %47 {offsets = [0, 0], sizes = [16, 20], strides = [1, 1]} : vector<16x40xf32> to vector<16x20xf32>
    %49 = vector.extract_strided_slice %47 {offsets = [0, 20], sizes = [16, 20], strides = [1, 1]} : vector<16x40xf32> to vector<16x20xf32>
    %50 = arith.mulf %48, %48 : vector<16x20xf32>
    %51 = arith.mulf %49, %49 : vector<16x20xf32>
    %52 = arith.addf %50, %51 : vector<16x20xf32>
    %53 = vector.broadcast %2 : f32 to vector<16x20xf32>
    %54 = arith.mulf %53, %52 : vector<16x20xf32>
    %cst_31 = arith.constant 1.000000e+00 : f32
    %55 = vector.broadcast %cst_31 : f32 to vector<16x20xf32>
    %56 = arith.addf %55, %54 : vector<16x20xf32>
    %57 = vector.broadcast %3 : f32 to vector<16x20xf32>
    %58 = arith.mulf %57, %52 : vector<16x20xf32>
    %59 = arith.mulf %58, %52 : vector<16x20xf32>
    %60 = arith.addf %56, %59 : vector<16x20xf32>
    %61 = tpu.concatenate %60, %60 in 1 : vector<16x20xf32>, vector<16x20xf32> -> vector<16x40xf32>
    %62 = arith.mulf %61, %47 : vector<16x40xf32>
    %c0_32 = arith.constant 0 : index
    %c0_33 = arith.constant 0 : index
    %63 = vector.load %arg12[%c0_32, %c0_33] : memref<16x40xf32, #tpu.memory_space<vmem>>, vector<16x40xf32>
    tpu.vector_store %arg12[%c0_32, %c0_33], %62 {strides = array<i32>} : memref<16x40xf32, #tpu.memory_space<vmem>>, vector<16x40xf32>,
    return
  }
  func.func @transform_0(%arg0: i32) -> i32 {
    %c0_i32 = arith.constant 0 : i32
    %c0_i32_0 = arith.constant 0 : i32
    return %c0_i32 : i32
  }
  func.func @transform_1(%arg0: i32) -> (i32, i32) {
    %c0_i32 = arith.constant 0 : i32
    %c0_i32_0 = arith.constant 0 : i32
    return %arg0, %c0_i32 : i32, i32
  }
  func.func @transform_2(%arg0: i32) -> (i32, i32) {
    %c0_i32 = arith.constant 0 : i32
    %c0_i32_0 = arith.constant 0 : i32
    %c0_i32_1 = arith.constant 0 : i32
    return %c0_i32, %c0_i32_0 : i32, i32
  }
  func.func @transform_3(%arg0: i32) -> (i32, i32) {
    %c0_i32 = arith.constant 0 : i32
    %c0_i32_0 = arith.constant 0 : i32
    %c0_i32_1 = arith.constant 0 : i32
    return %c0_i32, %c0_i32_0 : i32, i32
  }
  func.func @transform_4(%arg0: i32) -> (i32, i32) {
    %c0_i32 = arith.constant 0 : i32
    %c0_i32_0 = arith.constant 0 : i32
    %c0_i32_1 = arith.constant 0 : i32
    return %c0_i32, %c0_i32_0 : i32, i32
  }
  func.func @transform_5(%arg0: i32) -> (i32, i32) {
    %c0_i32 = arith.constant 0 : i32
    %c0_i32_0 = arith.constant 0 : i32
    %c0_i32_1 = arith.constant 0 : i32
    return %c0_i32, %c0_i32_0 : i32, i32
  }
  func.func @transform_6(%arg0: i32) -> (i32, i32) {
    %c0_i32 = arith.constant 0 : i32
    %c0_i32_0 = arith.constant 0 : i32
    %c0_i32_1 = arith.constant 0 : i32
    return %c0_i32, %c0_i32_0 : i32, i32
  }
  func.func @transform_7(%arg0: i32) -> (i32, i32) {
    %c0_i32 = arith.constant 0 : i32
    %c0_i32_0 = arith.constant 0 : i32
    %c0_i32_1 = arith.constant 0 : i32
    return %c0_i32, %c0_i32_0 : i32, i32
  }
  func.func @transform_8(%arg0: i32) -> (i32, i32) {
    %c0_i32 = arith.constant 0 : i32
    %c0_i32_0 = arith.constant 0 : i32
    %c0_i32_1 = arith.constant 0 : i32
    return %c0_i32, %c0_i32_0 : i32, i32
  }
  func.func @transform_9(%arg0: i32) -> (i32, i32) {
    %c0_i32 = arith.constant 0 : i32
    %c0_i32_0 = arith.constant 0 : i32
    %c0_i32_1 = arith.constant 0 : i32
    return %c0_i32, %c0_i32_0 : i32, i32
  }
  func.func @transform_10(%arg0: i32) -> (i32, i32) {
    %c0_i32 = arith.constant 0 : i32
    %c0_i32_0 = arith.constant 0 : i32
    %c0_i32_1 = arith.constant 0 : i32
    return %c0_i32, %c0_i32_0 : i32, i32
  }
  func.func @transform_11(%arg0: i32) -> (i32, i32) {
    %c0_i32 = arith.constant 0 : i32
    %c0_i32_0 = arith.constant 0 : i32
    return %arg0, %c0_i32 : i32, i32
  }
  func.func @transform_12(%arg0: i32) -> (i32, i32) {
    %c0_i32 = arith.constant 0 : i32
    %c0_i32_0 = arith.constant 0 : i32
    return %arg0, %c0_i32 : i32, i32
  }
}

</mosaic_0001>

<bundles_post_ra>
// kernel: net_forward.1
= control target key start
LH: loop header
LB: loop body
LE: loop exit
PB: predicated region body
PF: predicated region fallthrough
CT: control target
= control target key end

     0   :  { %18 = vsyncpa [#allocation4], 0  ;;  %s5353_s0 = inlined_call_operand.vmem [shape: f32[4], index: 0, kind: input, shape index: {}]   ;;  %s5354_s1 = inlined_call_operand.vmem [shape: bf16[32,40], index: 1, kind: input, shape index: {}]   ;;  %s5355_s2 = inlined_call_operand.vmem [shape: bf16[40,640], index: 2, kind: input, shape index: {}]   ;;  %s5356_s3 = inlined_call_operand.vmem [shape: f32[1,640], index: 3, kind: input, shape index: {}]   ;;  %s5357_s4 = inlined_call_operand.hbm [shape: bf16[640,640], index: 4, kind: input, shape index: {}]   ;;  %s5358_s5 = inlined_call_operand.vmem [shape: f32[1,640], index: 5, kind: input, shape index: {}]   ;;  %s5359_s6 = inlined_call_operand.hbm [shape: bf16[640,128], index: 6, kind: input, shape index: {}]   ;;  %s5360_s7 = inlined_call_operand.vmem [shape: f32[1,128], index: 7, kind: input, shape index: {}]   ;;  %s5361_s8 = inlined_call_operand.vmem [shape: f32[64,20], index: 8, kind: input, shape index: {}]   ;;  %s5362_s9 = inlined_call_operand.hbm [shape: f32[64,64], index: 9, kind: input, shape index: {}]   ;;  %s5363_s10 = inlined_call_operand.hbm [shape: f32[64,64], index: 10, kind: input, shape index: {}]   ;;  %s5364_s11 = inlined_call_operand.vmem [shape: f32[32,40], index: 11, kind: output, shape index: {0}]   ;;  %s5365_s12 = inlined_call_operand.vmem [shape: f32[32,128], index: 12, kind: output, shape index: {1}]  }
   0x1   :  { %19 = vsyncpa [#allocation3], 0 }
   0x2   :  { %20 = vsyncpa [#allocation7], 0 }
   0x3   :  { %21 = vsyncpa [#allocation10], 0  ;;  %s4865_s21 = smov 0  }
   0x4 LB: > { %s4784_s22 = smov [#allocation6]   ;;  %s3626_s24 = sadd.s32 4294967295, %s4782_s21   ;;  %s4782_s21 = sphi %s4865_s21, %s27_s21  }
   0x5   : > { %s365_s23 = sshll.u32 %s4784_s22, 4  ;;  %p3628_p0 = scmp.ge.s32.totalorder %s4782_s21, 1  ;;  %s366_s23 = int_to_ptr.vmem [resolvable:$true] %s365_s23 }
   0x6   : > { %p320_p1 = scmp.lt.s32.totalorder %s4782_s21, 3  ;;  %p4875_p2 = scmp.eq.s32.totalorder %s3626_s24, 0 }
   0x7   : > { %s333_s29 = sshll.u32 %s5353_s0, 4  ;;  %s4785_s13 = smov [#allocation5]   ;;  %s334_s29 = int_to_ptr.vmem [resolvable:$true] %s333_s29 }
   0x8   : > { %s5368_s25 = scalar_select %p4875_p2, 1, 0 }
   0x9   : > { %p4879_p3 = pnand %p3628_p0, %p320_p1  ;;  %s349_s14 = sshll.u32 %s4785_s13, 4  ;;  %s4894_s14 = int_to_ptr.vmem [resolvable:$true] %s349_s14 }
   0xa   : > { %s4652_s16 = scalar_lea.vmem %s366_s23, 5120  ;;  %p4660_p10 = scmp.lt.s32.totalorder %s366_s23, %s366_s23 }
   0xb   : > { %p4251_p4 = pneg %p4879_p3  ;;  %p4653_p7 = scmp.ne.s32.totalorder %s366_s23, %s4652_s16 }
   0xc   : > { %p4661_p11 = scmp.lt.s32.totalorder %s4652_s16, %s4652_s16 }
   0xd   : > { %p4890_p5 = pnand %p4875_p2, %p4251_p4 }
   0xe   : > { %p4662_p12 = por %p4661_p11, %p4660_p10 }
   0xf   : > { %p4898_p6 = pneg %p4890_p5 }
  0x11   : > { %p4655_p8 = pnand %p4653_p7, %p4898_p6 }
  0x13   : > { %p4656_p9 = pneg %p4655_p8 }
  0x15   : > { %p4663_p13 = pnand %p4662_p12, %p4656_p9 }
  0x17   : > { %4666 = shalt.err (!%p4663_p13)
}
  0x18   : > { %s4786_s17 = smov 64   ;;  %s4787_s18 = smov 4  }
  0x19   : > { %4260 = dma.hbm_to_vmem [thread:$0]  (!%p4890_p5), %s5359_s6, 5120, %s366_s23, [#allocation7], %s4786_s17, %s4786_s17, %s4787_s18  }
  0x1a   : > { %s4667_s22 = scalar_lea.vmem %s334_s29, 16  ;;  %p4675_p7 = scmp.lt.s32.totalorder %s334_s29, %s334_s29 }
  0x1b   : > { %p4668_p0 = scmp.ne.s32.totalorder %s334_s29, %s4667_s22  ;;  %p4676_p8 = scmp.lt.s32.totalorder %s4667_s22, %s4667_s22 }
  0x1d   : > { %p4670_p1 = pnand %p4668_p0, %p4898_p6  ;;  %p4677_p2 = por %p4676_p8, %p4675_p7 }
  0x1f   : > { %p4671_p4 = pneg %p4670_p1 }
  0x21   : > { %p4678_p10 = pnand %p4677_p2, %p4671_p4 }
  0x23   : > { %4681 = shalt.err (!%p4678_p10)
}
  0x24   : > { %s4788_s27 = smov [#allocation2]   ;;  %s4693_s28 = scalar_lea.vmem %s4894_s14, 25600 }
  0x25   : > { %4254 = dma.vmem_to_smem (!%p4890_p5), %s334_s29, 16, %s4788_s27, [#allocation4]  }
  0x26   : > { %p4694_p9 = scmp.ne.s32.totalorder %s4894_s14, %s4693_s28  ;;  %p4701_p13 = scmp.lt.s32.totalorder %s4894_s14, %s4894_s14 }
  0x27   : > { %p4702_p0 = scmp.lt.s32.totalorder %s4693_s28, %s4693_s28 }
  0x28   : > { %p4696_p11 = pnand %p4694_p9, %p4898_p6 }
  0x29   : > { %p4703_p1 = por %p4702_p0, %p4701_p13 }
  0x2a   : > { %p4697_p12 = pneg %p4696_p11 }
  0x2c   : > { %p4704_p7 = pnand %p4703_p1, %p4697_p12 }
  0x2e   : > { %4707 = shalt.err (!%p4704_p7)
}
  0x2f   : > { %s4789_s23 = smov 320   ;;  %s4790_s13 = smov 20  }
  0x30   : > { %4257 = dma.hbm_to_vmem [thread:$0]  (!%p4890_p5), %s5357_s4, 25600, %s4894_s14, [#allocation3], %s4789_s23, %s4789_s23, %s4790_s13  }
  0x31   : > { %s4791_s29 = smov [#allocation8]  }
  0x32   : > { %s384_s18 = sshll.u32 %s4791_s29, 4  ;;  %s385_s18 = int_to_ptr.vmem [resolvable:$true] %s384_s18 }
  0x33   : > { %s4719_s19 = scalar_lea.vmem %s385_s18, 1024  ;;  %p4727_p10 = scmp.lt.s32.totalorder %s385_s18, %s385_s18 }
  0x34   : > { %p4720_p2 = scmp.ne.s32.totalorder %s385_s18, %s4719_s19  ;;  %p4728_p9 = scmp.lt.s32.totalorder %s4719_s19, %s4719_s19 }
  0x36   : > { %p4722_p4 = pnand %p4720_p2, %p4898_p6  ;;  %p4729_p11 = por %p4728_p9, %p4727_p10 }
  0x38   : > { %p4723_p8 = pneg %p4722_p4 }
  0x3a   : > { %p4730_p12 = pnand %p4729_p11, %p4723_p8 }
  0x3c   : > { %4733 = shalt.err (!%p4730_p12)
}
  0x3d   : > { %s4792_s20 = smov 128   ;;  %s4793_s22 = smov 8  }
  0x3e   : > { %4263 = dma.hbm_to_vmem [thread:$0]  (!%p4890_p5), %s5362_s9, 1024, %s385_s18, [#allocation7], %s4792_s20, %s4792_s20, %s4793_s22  }
  0x3f   : > { %s4794_s28 = smov [#allocation9]  }
  0x40   : > { %s397_s23 = sshll.u32 %s4794_s28, 4  ;;  %s398_s23 = int_to_ptr.vmem [resolvable:$true] %s397_s23 }
  0x41   : > { %s4745_s13 = scalar_lea.vmem %s398_s23, 1024  ;;  %p4753_p7 = scmp.lt.s32.totalorder %s398_s23, %s398_s23 }
  0x42   : > { %p4746_p13 = scmp.ne.s32.totalorder %s398_s23, %s4745_s13  ;;  %p4754_p2 = scmp.lt.s32.totalorder %s4745_s13, %s4745_s13 }
  0x44   : > { %p4748_p0 = pnand %p4746_p13, %p4898_p6  ;;  %p4755_p4 = por %p4754_p2, %p4753_p7 }
  0x46   : > { %p4749_p1 = pneg %p4748_p0 }
  0x48   : > { %p4756_p8 = pnand %p4755_p4, %p4749_p1 }
  0x4a   : > { %4759 = shalt.err (!%p4756_p8)
}
  0x4b   : > { %4266 = dma.hbm_to_vmem [thread:$0]  (!%p4890_p5), %s5363_s10, 1024, %s398_s23, [#allocation10], %s4792_s20, %s4792_s20, %s4793_s22  }
  0x4c   : > { %422 = sbr.rel (%p4879_p3) target bundleno = 1467 (0x5bb), region = 64  ;;  %p5372_p10 = scmp.ne.s32.totalorder (!%p4879_p3), %s5368_s25, 0 }
  0x51   : > { %4765 = dma.done.wait (%p5372_p10), [#allocation4], 16  }
  0x52   : > { %4767 = vsyncadd (%p5372_p10), [#allocation4], 4294967280 }
  0x53   : > { %4769 = dma.done.wait (%p5372_p10), [#allocation3], 25600  }
  0x54   : > { %4771 = vsyncadd (%p5372_p10), [#allocation3], 4294941696 }
  0x55   : > { %4773 = dma.done.wait (%p5372_p10), [#allocation7], 6144  }
  0x56   : > { %4775 = vsyncadd (%p5372_p10), [#allocation7], 4294961152 }
  0x57   : > { %4777 = dma.done.wait (%p5372_p10), [#allocation10], 1024  }
  0x58   : > { %4779 = vsyncadd (%p5372_p10), [#allocation10], 4294966272 }
  0x59   : > { %444 = sfence }
  0x5a   : > { %v523_v0 = vld [vmem:[%s5355_s2 + $0x50] sm:$0xff]  ;;  %vm627_vm0 = vcmask 1043456   ;;  %v524_v1 = vld [vmem:[%s5355_s2 + $0x58] sm:$0xff]  ;;  %s3641_s18 = sshll.u32 %s3626_s24, 1  ;;  %v4305_v6 = vld [vmem:[%s5355_s2 + $0x2c] ss:$20 sps:$4 sm:$0xff]  }
  0x5b   : > { %v3662_v2 = vcombine.high %v523_v0, %v523_v0  ;;  %v3664_v3 = vcombine.high %v524_v1, %v524_v1  ;;  %v3661_v4 = vcombine.low %v523_v0, %v523_v0  ;;  %v3663_v5 = vcombine.low %v524_v1, %v524_v1  ;;  %p487_p3 = scmp.lt.s32.totalorder %s3641_s18, 3  ;;  %v4307_v8 = vld [vmem:[%s5355_s2 + $0x34] ss:$20 sps:$4 sm:$0xff]   ;;  %v4310_v12 = vld [vmem:[%s5355_s2 + $0x30] ss:$20 sps:$4 sm:$0xff]   ;;  %s3647_s30 = sld [smem:[#allocation2 + $0x1]] }
  0x5c   : > { %v4795_v7 = vmov 0   ;;  %v4309_v11 = vld [vmem:[%s5355_s2 + $0x28] ss:$20 sps:$4 sm:$0xff]   ;;  %v4311_v13 = vld [vmem:[%s5355_s2 + $0x4] ss:$20 sps:$4 sm:$0xff]   ;;  %vm623_vm1 = vcmask 326656  }
  0x5d   : > { %675 = vmatprep.mubr.bf16.mxu0 %v4795_v7  ;;  %718 = vmatprep.mubr.bf16.mxu1 %v4795_v7  ;;  %v629_v9 = vsel %vm627_vm0, %v3661_v4, 0  ;;  %v635_v10 = vsel %vm627_vm0, %v3663_v5, 0  ;;  %s5374_s18 = smov (!%p487_p3, %s3641_s18), 3  ;;  %v4313_v14 = vld [vmem:[%s5355_s2 + $0xc] ss:$20 sps:$4 sm:$0xff]   ;;  %v4796_v20 = vmov 0.0  }
  0x5e   : > { %3666 = vmatprep.subr.msk.bf16.mxu0 %vm627_vm0, %v3662_v2  ;;  %3668 = vmatprep.subr.msk.bf16.mxu1 %vm627_vm0, %v3664_v3  ;;  %s3642_s26 = sshll.u32 %s5374_s18, 2  ;;  %v4315_v15 = vld [vmem:[%s5355_s2] ss:$20 sps:$4 sm:$0xff]   ;;  %v4316_v16 = vld [vmem:[%s5355_s2 + $0x8] ss:$20 sps:$4 sm:$0xff]   ;;  %vm4797_vm2 = vmmov 0  }
  0x5f   : > { %654 = vmatpush1.bf16.msra.mxu0 %v629_v9  ;;  %697 = vmatpush1.bf16.msra.mxu1 %v635_v10  ;;  %s490_s25 = scalar_lea.vmem %s5354_s1, %s3642_s26  ;;  %v4318_v17 = vld [vmem:[%s5355_s2 + $0x60] ss:$0 sps:$4 sm:$0xff]   ;;  %v4323_v19 = vld [vmem:[#allocation5 + $0x11c] ss:$20 sps:$4 sm:$0xff]   ;;  %v4321_v22 = vld [vmem:[#allocation5 + $0x118] ss:$20 sps:$4 sm:$0xff]  }
  0x60   : > { %655 = vmatprep.subr.bf16.mxu0 %v4305_v6  ;;  %698 = vmatprep.subr.bf16.mxu1 %v4307_v8  ;;  %v4317_v18 = vld [vmem:[%s490_s25] sm:$0xff]   ;;  %v641_v21 = vsel %vm627_vm0, %v4318_v17, 0  ;;  %v4329_v23 = vld [vmem:[#allocation5 + $0xf4] ss:$20 sps:$4 sm:$0xff]   ;;  %v4319_v24 = vld [vmem:[%s5355_s2 + $0x38] ss:$20 sps:$4 sm:$0xff]  }
  0x61   : > { %v4327_v25 = vld [vmem:[#allocation5 + $0xf0] ss:$20 sps:$4 sm:$0xff]   ;;  %v4335_v26 = vld [vmem:[#allocation5 + $0xcc] ss:$20 sps:$4 sm:$0xff]   ;;  %v4333_v29 = vld [vmem:[#allocation5 + $0xc8] ss:$20 sps:$4 sm:$0xff]  }
  0x62   : > { %v4320_v27 = vld [vmem:[%s5355_s2 + $0x10] ss:$20 sps:$4 sm:$0xff]   ;;  %v4324_v31 = vld [vmem:[#allocation5 + $0x398] ss:$20 sps:$4 sm:$0xff]   ;;  %v4332_v32 = vld [vmem:[#allocation5 + $0x374] ss:$20 sps:$4 sm:$0xff]  }
  0x63   : > { %656 = vmatpush1.bf16.msra.mxu0 %v4309_v11  ;;  %699 = vmatpush1.bf16.msra.mxu1 %v4310_v12  ;;  %v4326_v28 = vld [vmem:[#allocation5 + $0x39c] ss:$20 sps:$4 sm:$0xff]   ;;  %v4341_v30 = vld [vmem:[#allocation5 + $0xa4] ss:$20 sps:$4 sm:$0xff]   ;;  %v4339_v33 = vld [vmem:[#allocation5 + $0xa0] ss:$20 sps:$4 sm:$0xff]  }
  0x64   : > { %657 = vmatprep.subr.bf16.mxu0 %v4311_v13  ;;  %700 = vmatprep.subr.bf16.mxu1 %v4313_v14  ;;  %v4347_v34 = vld [vmem:[#allocation5 + $0x7c] ss:$20 sps:$4 sm:$0xff]   ;;  %v4338_v36 = vld [vmem:[#allocation5 + $0x34c] ss:$20 sps:$4 sm:$0xff]   ;;  %v4353_v38 = vld [vmem:[#allocation5 + $0x54] ss:$20 sps:$4 sm:$0xff]  }
  0x65   : > { %v4330_v35 = vld [vmem:[#allocation5 + $0x370] ss:$20 sps:$4 sm:$0xff]   ;;  %v4345_v37 = vld [vmem:[#allocation5 + $0x78] ss:$20 sps:$4 sm:$0xff]   ;;  %v4336_v39 = vld [vmem:[#allocation5 + $0x348] ss:$20 sps:$4 sm:$0xff]  }
  0x66   : > { %v4344_v40 = vld [vmem:[#allocation5 + $0x324] ss:$20 sps:$4 sm:$0xff]   ;;  %v4359_v42 = vld [vmem:[#allocation5 + $0x2c] ss:$20 sps:$4 sm:$0xff]   ;;  %v4350_v44 = vld [vmem:[#allocation5 + $0x2fc] ss:$20 sps:$4 sm:$0xff]  }
  0x67   : > { %658 = vmatpush1.bf16.msra.mxu0 %v4315_v15  ;;  %701 = vmatpush1.bf16.msra.mxu1 %v4316_v16  ;;  %v4351_v41 = vld [vmem:[#allocation5 + $0x50] ss:$20 sps:$4 sm:$0xff]   ;;  %v4342_v43 = vld [vmem:[#allocation5 + $0x320] ss:$20 sps:$4 sm:$0xff]   ;;  %v4357_v45 = vld [vmem:[#allocation5 + $0x28] ss:$20 sps:$4 sm:$0xff]  }
  0x68   : > { %4090 = vmatprep.subr.bf16.mxu0 %v4796_v20  ;;  %2092 = vmatprep.subr.bf16.mxu1 %v4323_v19  ;;  %v4365_v46 = vld [vmem:[#allocation5 + $0x4] ss:$20 sps:$4 sm:$0xff]   ;;  %v4356_v48 = vld [vmem:[#allocation5 + $0x2d4] ss:$20 sps:$4 sm:$0xff]   ;;  %v4371_v50 = vld [vmem:[#allocation5 + $0x25c] ss:$20 sps:$4 sm:$0xff]  }
  0x69   : > { %v4348_v47 = vld [vmem:[#allocation5 + $0x2f8] ss:$20 sps:$4 sm:$0xff]   ;;  %v4363_v49 = vld [vmem:[#allocation5] ss:$20 sps:$4 sm:$0xff]   ;;  %v4354_v51 = vld [vmem:[#allocation5 + $0x2d0] ss:$20 sps:$4 sm:$0xff]  }
  0x6a   : > { %3667 = vmatmul.mubr.msk.bf16.vlgmr.msra.gmra.mxu0 %vm623_vm1, %v4317_v18  ;;  %3669 = vmatmul.mubr.msk.bf16.vlgmr.msra.gmra.mxu1 %vm623_vm1, %v4317_v18  ;;  %v4362_v52 = vld [vmem:[#allocation5 + $0x2ac] ss:$20 sps:$4 sm:$0xff]   ;;  %v4377_v54 = vld [vmem:[#allocation5 + $0x234] ss:$20 sps:$4 sm:$0xff]   ;;  %v4368_v56 = vld [vmem:[#allocation5 + $0x284] ss:$20 sps:$4 sm:$0xff]  }
  0x6b   : > { %4091 = vmatpush3.bf16.msra.mxu0 %v641_v21  ;;  %4096 = vmatprep.mubr.msk.bf16.mxu0 %vm4797_vm2, %v4796_v20  ;;  %v4369_v53 = vld [vmem:[#allocation5 + $0x258] ss:$20 sps:$4 sm:$0xff]   ;;  %v4360_v55 = vld [vmem:[#allocation5 + $0x2a8] ss:$20 sps:$4 sm:$0xff]   ;;  %v4375_v57 = vld [vmem:[#allocation5 + $0x230] ss:$20 sps:$4 sm:$0xff]  }
  0x6c   : > { %4092 = vmatprep.subr.bf16.mxu0 %v4796_v20  ;;  %2093 = vmatpush1.bf16.msra.mxu1 %v4321_v22  ;;  %v4383_v58 = vld [vmem:[#allocation5 + $0x20c] ss:$20 sps:$4 sm:$0xff]   ;;  %v4374_v60 = vld [vmem:[#allocation5 + $0x4dc] ss:$20 sps:$4 sm:$0xff]   ;;  %v4389_v62 = vld [vmem:[#allocation5 + $0x1e4] ss:$20 sps:$4 sm:$0xff]  }
  0x6d   : > { %2094 = vmatprep.subr.bf16.mxu1 %v4329_v23  ;;  %v4366_v59 = vld [vmem:[#allocation5 + $0x280] ss:$20 sps:$4 sm:$0xff]   ;;  %v4381_v61 = vld [vmem:[#allocation5 + $0x208] ss:$20 sps:$4 sm:$0xff]   ;;  %v4372_v63 = vld [vmem:[#allocation5 + $0x4d8] ss:$20 sps:$4 sm:$0xff]  }
  0x6e   : > { %v4380_v0 = vld [vmem:[#allocation5 + $0x4b4] ss:$20 sps:$4 sm:$0xff]   ;;  %v4395_v2 = vld [vmem:[#allocation5 + $0x1bc] ss:$20 sps:$4 sm:$0xff]   ;;  %v4386_v4 = vld [vmem:[#allocation5 + $0x48c] ss:$20 sps:$4 sm:$0xff]  }
  0x6f   : > { %4093 = vmatpush3.bf16.msra.mxu0 %v4319_v24  ;;  %v4387_v1 = vld [vmem:[#allocation5 + $0x1e0] ss:$20 sps:$4 sm:$0xff]   ;;  %v4378_v3 = vld [vmem:[#allocation5 + $0x4b0] ss:$20 sps:$4 sm:$0xff]   ;;  %v4393_v5 = vld [vmem:[#allocation5 + $0x1b8] ss:$20 sps:$4 sm:$0xff]  }
  0x70   : > { %4094 = vmatprep.subr.bf16.mxu0 %v4796_v20  ;;  %2095 = vmatpush1.bf16.msra.mxu1 %v4327_v25  ;;  %v4384_v6 = vld [vmem:[#allocation5 + $0x488] ss:$20 sps:$4 sm:$0xff]   ;;  %v4392_v8 = vld [vmem:[#allocation5 + $0x464] ss:$20 sps:$4 sm:$0xff]   ;;  %v4390_v9 = vld [vmem:[#allocation5 + $0x460] ss:$20 sps:$4 sm:$0xff]  }
  0x71   : > { %2096 = vmatprep.subr.bf16.mxu1 %v4335_v26  ;;  %v4398_v10 = vld [vmem:[#allocation5 + $0x43c] ss:$20 sps:$4 sm:$0xff]   ;;  %v4396_v11 = vld [vmem:[#allocation5 + $0x438] ss:$20 sps:$4 sm:$0xff]   ;;  %v4401_v12 = vld [vmem:[#allocation5 + $0x194] ss:$20 sps:$4 sm:$0xff]  }
  0x72   : > { %v4404_v13 = vld [vmem:[#allocation5 + $0x414] ss:$20 sps:$4 sm:$0xff]   ;;  %v4399_v14 = vld [vmem:[#allocation5 + $0x190] ss:$20 sps:$4 sm:$0xff]   ;;  %v4407_v16 = vld [vmem:[#allocation5 + $0x16c] ss:$20 sps:$4 sm:$0xff]  }
  0x73   : > { %4095 = vmatpush3.bf16.msra.mxu0 %v4320_v27  ;;  %v4402_v15 = vld [vmem:[#allocation5 + $0x410] ss:$20 sps:$4 sm:$0xff]   ;;  %v4410_v17 = vld [vmem:[#allocation5 + $0x3ec] ss:$20 sps:$4 sm:$0xff]   ;;  %v4408_v19 = vld [vmem:[#allocation5 + $0x3e8] ss:$20 sps:$4 sm:$0xff]   ;;  %v528_v27 = vlaneseq }
  0x74   : > { %2135 = vmatprep.subr.bf16.mxu0 %v4326_v28  ;;  %2097 = vmatpush1.bf16.msra.mxu1 %v4333_v29  ;;  %v4413_v21 = vld [vmem:[#allocation5 + $0x144] ss:$20 sps:$4 sm:$0xff]   ;;  %v4411_v23 = vld [vmem:[#allocation5 + $0x140] ss:$20 sps:$4 sm:$0xff]   ;;  %v4419_v25 = vld [vmem:[#allocation5 + $0x61c] ss:$20 sps:$4 sm:$0xff]  }
  0x75   : > { %2098 = vmatprep.subr.bf16.mxu1 %v4341_v30  ;;  %v4416_v22 = vld [vmem:[#allocation5 + $0x3c4] ss:$20 sps:$4 sm:$0xff]   ;;  %v4414_v24 = vld [vmem:[#allocation5 + $0x3c0] ss:$20 sps:$4 sm:$0xff]   ;;  %v5019_v28 = vshrl.u32 %v528_v27, 7  ;;  %s505_s26 = sld [smem:[#allocation2]] }
  0x76   : > { %4097 = vmatmul.mubr.msk.bf16.vlgmr.msra.gmra.mxu0 %vm623_vm1, %v4317_v18  ;;  %v4405_v18 = vld [vmem:[#allocation5 + $0x168] ss:$20 sps:$4 sm:$0xff]   ;;  %v4422_v26 = vld [vmem:[#allocation5 + $0x124] ss:$20 sps:$4 sm:$0xff]   ;;  %vm3014_vm3 = vcmask 523264   ;;  %s4798_s19 = smov 20  }
  0x77   : > { %2136 = vmatpush1.bf16.msra.mxu0 %v4324_v31  ;;  %v538_v29 = vsub.s32 2, %v5019_v28  ;;  %v542_v30 = vsub.s32 3, %v5019_v28  ;;  %v5026_v31 = vld [vmem:[%s5356_s3] sm:$0x1f]  ;;  %v4449_v27 = vld [vmem:[#allocation5 + $0x554] ss:$20 sps:$4 sm:$0xff]  }
  0x78   : > { %2137 = vmatprep.subr.bf16.mxu0 %v4332_v32  ;;  %2099 = vmatpush1.bf16.msra.mxu1 %v4339_v33  ;;  %v534_v32 = vsub.s32 1, %v5019_v28  ;;  %v530_v33 = vsub.s32 0, %v5019_v28  ;;  %s3644_s22 = sshll.u32 %s5374_s18, 3  ;;  %vm3313_vm4 = vcmask 162816   ;;  %s4799_s28 = smov 108  }
  0x79   : > { %2100 = vmatprep.subr.bf16.mxu1 %v4347_v34  ;;  %v539_v34 = vrot.slane %v5026_v31, %v538_v29  ;;  %s502_s14 = scalar_lea.vmem %s5365_s12, %s3644_s22  ;;  %s3648_s23 = sld [smem:[#allocation2 + $0x2]] }
  0x7a   : > { %s3649_s13 = sld [smem:[#allocation2 + $0x3]] }
  0x7b   : > { %2138 = vmatpush1.bf16.msra.mxu0 %v4330_v35  ;;  %v543_v35 = vrot.slane %v5026_v31, %v542_v30 }
  0x7c   : > { %2139 = vmatprep.subr.bf16.mxu0 %v4338_v36  ;;  %2101 = vmatpush1.bf16.msra.mxu1 %v4345_v37 }
  0x7d   : > { %2102 = vmatprep.subr.bf16.mxu1 %v4353_v38  ;;  %v535_v38 = vrot.slane %v5026_v31, %v534_v32 }
  0x7f   : > { %2140 = vmatpush1.bf16.msra.mxu0 %v4336_v39  ;;  %v531_v39 = vrot.slane %v5026_v31, %v530_v33 }
  0x80   : > { %2141 = vmatprep.subr.bf16.mxu0 %v4344_v40  ;;  %2103 = vmatpush1.bf16.msra.mxu1 %v4351_v41 }
  0x81   : > { %2104 = vmatprep.subr.bf16.mxu1 %v4359_v42 }
  0x83   : > { %2142 = vmatpush1.bf16.msra.mxu0 %v4342_v43 }
  0x84   : > { %2143 = vmatprep.subr.bf16.mxu0 %v4350_v44  ;;  %2105 = vmatpush1.bf16.msra.mxu1 %v4357_v45 }
  0x85   : > { %2106 = vmatprep.subr.bf16.mxu1 %v4365_v46 }
  0x87   : > { %2144 = vmatpush1.bf16.msra.mxu0 %v4348_v47 }
  0x88   : > { %2145 = vmatprep.subr.bf16.mxu0 %v4356_v48  ;;  %2107 = vmatpush1.bf16.msra.mxu1 %v4363_v49 }
  0x89   : > { %2108 = vmatprep.subr.bf16.mxu1 %v4371_v50 }
  0x8b   : > { %2146 = vmatpush1.bf16.msra.mxu0 %v4354_v51 }
  0x8c   : > { %2147 = vmatprep.subr.bf16.mxu0 %v4362_v52  ;;  %2109 = vmatpush2.bf16.msra.mxu1 %v4369_v53 }
  0x8d   : > { %2110 = vmatprep.subr.bf16.mxu1 %v4377_v54 }
  0x8f   : > { %2148 = vmatpush1.bf16.msra.mxu0 %v4360_v55 }
  0x90   : > { %2149 = vmatprep.subr.bf16.mxu0 %v4368_v56  ;;  %2111 = vmatpush2.bf16.msra.mxu1 %v4375_v57 }
  0x91   : > { %2112 = vmatprep.subr.bf16.mxu1 %v4383_v58 }
  0x93   : > { %2150 = vmatpush1.bf16.msra.mxu0 %v4366_v59 }
  0x94   : > { %2151 = vmatprep.subr.bf16.mxu0 %v4374_v60  ;;  %2113 = vmatpush2.bf16.msra.mxu1 %v4381_v61 }
  0x95   : > { %2114 = vmatprep.subr.bf16.mxu1 %v4389_v62 }
  0x97   : > { %2152 = vmatpush2.bf16.msra.mxu0 %v4372_v63 }
  0x98   : > { %2153 = vmatprep.subr.bf16.mxu0 %v4380_v0  ;;  %2115 = vmatpush2.bf16.msra.mxu1 %v4387_v1  ;;  %v4417_v1 = vld [vmem:[#allocation5 + $0x618] ss:$20 sps:$4 sm:$0xff]  }
  0x99   : > { %2116 = vmatprep.subr.bf16.mxu1 %v4395_v2  ;;  %v4420_v2 = vld [vmem:[#allocation5 + $0x120] ss:$20 sps:$4 sm:$0xff]  }
  0x9b   : > { %2154 = vmatpush2.bf16.msra.mxu0 %v4378_v3 }
  0x9c   : > { %2155 = vmatprep.subr.bf16.mxu0 %v4386_v4  ;;  %2117 = vmatpush2.bf16.msra.mxu1 %v4393_v5  ;;  %v4425_v4 = vld [vmem:[#allocation5 + $0x5f4] ss:$20 sps:$4 sm:$0xff]  }
  0x9d   : > { %2118 = vmatprep.subr.bf16.mxu1 %v4401_v12  ;;  %v4434_v12 = vld [vmem:[#allocation5 + $0xd4] ss:$20 sps:$4 sm:$0xff]  }
  0x9f   : > { %2156 = vmatpush2.bf16.msra.mxu0 %v4384_v6  ;;  %v4428_v6 = vld [vmem:[#allocation5 + $0xfc] ss:$20 sps:$4 sm:$0xff]  }
  0xa0   : > { %2157 = vmatprep.subr.bf16.mxu0 %v4392_v8  ;;  %2119 = vmatpush2.bf16.msra.mxu1 %v4399_v14 }
  0xa1   : > { %2120 = vmatprep.subr.bf16.mxu1 %v4407_v16  ;;  %v4432_v16 = vld [vmem:[#allocation5 + $0xd0] ss:$20 sps:$4 sm:$0xff]  }
  0xa3   : > { %2158 = vmatpush2.bf16.msra.mxu0 %v4390_v9  ;;  %v4423_v9 = vld [vmem:[#allocation5 + $0x5f0] ss:$20 sps:$4 sm:$0xff]  }
  0xa4   : > { %2159 = vmatprep.subr.bf16.mxu0 %v4398_v10  ;;  %2121 = vmatpush2.bf16.msra.mxu1 %v4405_v18  ;;  %v4426_v10 = vld [vmem:[#allocation5 + $0xf8] ss:$20 sps:$4 sm:$0xff]  }
  0xa5   : > { %2122 = vmatprep.subr.bf16.mxu1 %v4413_v21  ;;  %v4440_v18 = vld [vmem:[#allocation5 + $0xac] ss:$20 sps:$4 sm:$0xff]   ;;  %v4438_v21 = vld [vmem:[#allocation5 + $0xa8] ss:$20 sps:$4 sm:$0xff]  }
  0xa7   : > { %2160 = vmatpush2.bf16.msra.mxu0 %v4396_v11  ;;  %v4431_v11 = vld [vmem:[#allocation5 + $0x5cc] ss:$20 sps:$4 sm:$0xff]  }
  0xa8   : > { %2161 = vmatprep.subr.bf16.mxu0 %v4404_v13  ;;  %2123 = vmatpush2.bf16.msra.mxu1 %v4411_v23  ;;  %v4446_v23 = vld [vmem:[#allocation5 + $0x84] ss:$20 sps:$4 sm:$0xff]  }
  0xa9   : > { %2178 = vmatprep.subr.bf16.mxu1 %v4419_v25  ;;  %v4444_v25 = vld [vmem:[#allocation5 + $0x80] ss:$20 sps:$4 sm:$0xff]  }
  0xab   : > { %2162 = vmatpush2.bf16.msra.mxu0 %v4402_v15  ;;  %v4429_v15 = vld [vmem:[#allocation5 + $0x5c8] ss:$20 sps:$4 sm:$0xff]  }
  0xac   : > { %2163 = vmatprep.subr.bf16.mxu0 %v4410_v17  ;;  %v4437_v17 = vld [vmem:[#allocation5 + $0x5a4] ss:$20 sps:$4 sm:$0xff]  }
  0xaf   : > { %2164 = vmatpush2.bf16.msra.mxu0 %v4408_v19  ;;  %v4435_v19 = vld [vmem:[#allocation5 + $0x5a0] ss:$20 sps:$4 sm:$0xff]  }
  0xb0   : > { %2165 = vmatprep.subr.bf16.mxu0 %v4416_v22  ;;  %v4443_v22 = vld [vmem:[#allocation5 + $0x57c] ss:$20 sps:$4 sm:$0xff]  }
  0xb3   : > { %2166 = vmatpush2.bf16.msra.mxu0 %v4414_v24  ;;  %v4441_v24 = vld [vmem:[#allocation5 + $0x578] ss:$20 sps:$4 sm:$0xff]  }
  0xb4   : > { %2221 = vmatprep.subr.bf16.mxu0 %v4422_v26  ;;  %v546_v26 = vsub.s32 4, %v5019_v28 }
 0x12a   : > { %v677_v36 = vpop.f32.mrf.mxu0  ;;  %v720_v37 = vpop.f32.mrf.mxu1 }
 0x12b   : > { %v721_v40 = vadd.f32 %v720_v37, %v539_v34  ;;  %v678_v49 = vadd.f32 %v677_v36, %v531_v39  ;;  %v4450_v36 = vld [vmem:[#allocation5 + $0x58] ss:$20 sps:$4 sm:$0xff]   ;;  %v547_v37 = vrot.slane %v5026_v31, %v546_v26 }
 0x12c   : > { %v679_v41 = vpop.f32.mrf.mxu0  ;;  %v722_v42 = vpop.f32.mrf.mxu1 }
 0x12d   : > { %v723_v43 = vadd.f32 %v722_v42, %v543_v35  ;;  %v680_v46 = vadd.f32 %v679_v41, %v535_v38  ;;  %v772_v50 = vmax.f32 %v721_v40, 0.0  ;;  %v770_v61 = vmax.f32 %v678_v49, 0.0  ;;  %v4453_v40 = vld [vmem:[#allocation5 + $0x528] ss:$20 sps:$4 sm:$0xff]   ;;  %v4456_v41 = vld [vmem:[#allocation5 + $0x30] ss:$20 sps:$4 sm:$0xff]  }
 0x12e   : > { %v681_v44 = vpop.f32.mrf.mxu0  ;;  %v724_v45 = vpop.f32.mrf.mxu1  ;;  %v4467_v49 = vld [vmem:[#allocation5 + $0x264] ss:$20 sps:$4 sm:$0xff]  }
 0x12f   : > { %v682_v47 = vadd.f32 %v681_v44, %v531_v39  ;;  %v725_v48 = vadd.f32 %v724_v45, %v539_v34  ;;  %v773_v53 = vmax.f32 %v723_v43, 0.0  ;;  %v771_v58 = vmax.f32 %v680_v46, 0.0  ;;  %v4452_v34 = vld [vmem:[#allocation5 + $0x5c] ss:$20 sps:$4 sm:$0xff]   ;;  %v4458_v39 = vld [vmem:[#allocation5 + $0x34] ss:$20 sps:$4 sm:$0xff]  }
 0x130   : > { %v683_v51 = vpop.f32.mrf.mxu0  ;;  %v726_v52 = vpop.f32.mrf.mxu1  ;;  %v4461_v44 = vld [vmem:[#allocation5 + $0x504] ss:$20 sps:$4 sm:$0xff]   ;;  %v4464_v45 = vld [vmem:[#allocation5 + $0xc] ss:$20 sps:$4 sm:$0xff]  }
 0x131   : > { %v777_v54 = vmax.f32 %v725_v48, 0.0  ;;  %v684_v55 = vadd.f32 %v683_v51, %v535_v38  ;;  %v727_v56 = vadd.f32 %v726_v52, %v543_v35  ;;  %v775_v57 = vmax.f32 %v682_v47, 0.0  ;;  %v4447_v35 = vld [vmem:[#allocation5 + $0x550] ss:$20 sps:$4 sm:$0xff]   ;;  %v4455_v38 = vld [vmem:[#allocation5 + $0x52c] ss:$20 sps:$4 sm:$0xff]  }
 0x132   : > { %v4459_v46 = vld [vmem:[#allocation5 + $0x500] ss:$20 sps:$4 sm:$0xff]   ;;  %v4462_v47 = vld [vmem:[#allocation5 + $0x8] ss:$20 sps:$4 sm:$0xff]  }
 0x133   : > { %v776_v59 = vmax.f32 %v684_v55, 0.0  ;;  %v778_v60 = vmax.f32 %v727_v56, 0.0  ;;  %v5042_v62 = vpack.c.bf16 %v777_v54, %v772_v50  ;;  %v5048_v3 = vpack.c.bf16 %v775_v57, %v770_v61  ;;  %v4470_v50 = vld [vmem:[#allocation5 + $0x3a4] ss:$20 sps:$4 sm:$0xff]   ;;  %v4465_v51 = vld [vmem:[#allocation5 + $0x260] ss:$20 sps:$4 sm:$0xff]  }
 0x134   : > { %v4468_v52 = vld [vmem:[#allocation5 + $0x3a0] ss:$20 sps:$4 sm:$0xff]   ;;  %v4473_v54 = vld [vmem:[#allocation5 + $0x23c] ss:$20 sps:$4 sm:$0xff]   ;;  %v4471_v56 = vld [vmem:[#allocation5 + $0x238] ss:$20 sps:$4 sm:$0xff]  }
 0x135   : > { %v5044_v63 = vpack.c.bf16 %v776_v59, %v771_v58  ;;  %v5046_v0 = vpack.c.bf16 %v778_v60, %v773_v53  ;;  %v4476_v55 = vld [vmem:[#allocation5 + $0x37c] ss:$20 sps:$4 sm:$0xff]   ;;  %v4474_v57 = vld [vmem:[#allocation5 + $0x378] ss:$20 sps:$4 sm:$0xff]   ;;  %v4479_v58 = vld [vmem:[#allocation5 + $0x214] ss:$20 sps:$4 sm:$0xff]  }
 0x136   : > { %v763_v5 = vpop.f32.mrf.mxu0  ;;  %v4482_v59 = vld [vmem:[#allocation5 + $0x354] ss:$20 sps:$4 sm:$0xff]   ;;  %v4477_v60 = vld [vmem:[#allocation5 + $0x210] ss:$20 sps:$4 sm:$0xff]  }
 0x137   : > { %2124 = vmatprep.mubr.bf16.mxu1 %v5044_v63  ;;  %2167 = vmatprep.mubr.bf16.mxu0 %v5046_v0  ;;  %v764_v42 = vadd.f32 %v763_v5, %v547_v37  ;;  %v4480_v61 = vld [vmem:[#allocation5 + $0x350] ss:$20 sps:$4 sm:$0xff]   ;;  %v4486_v5 = vld [vmem:[#allocation5 + $0x328] ss:$20 sps:$4 sm:$0xff]  }
 0x138   : > { %2125 = vmatmul.mubr.bf16.vlgmr.msra.gmra.mxu1 %v5048_v3  ;;  %2168 = vmatmul.mubr.bf16.vlgmr.msra.gmra.mxu0 %v5042_v62  ;;  %v4098_v8 = vpop.f32.mrf.mxu0 }
 0x139   : > { %2179 = vmatpush1.bf16.msra.mxu1 %v4417_v1  ;;  %2222 = vmatpush1.bf16.msra.mxu0 %v4420_v2  ;;  %v774_v48 = vmax.f32 %v764_v42, 0.0  ;;  %v4485_v1 = vld [vmem:[#allocation5 + $0x1ec] ss:$20 sps:$4 sm:$0xff]   ;;  %v4494_v8 = vld [vmem:[#allocation5 + $0x304] ss:$20 sps:$4 sm:$0xff]  }
 0x13a   : > { %2253 = vmatprep.mubr.bf16.mxu0 %v5044_v63  ;;  %2180 = vmatprep.subr.bf16.mxu1 %v4425_v4  ;;  %v766_v13 = vpop.f32.mrf.mxu0  ;;  %v4488_v2 = vld [vmem:[#allocation5 + $0x32c] ss:$20 sps:$4 sm:$0xff]   ;;  %v4483_v4 = vld [vmem:[#allocation5 + $0x1e8] ss:$20 sps:$4 sm:$0xff]   ;;  %v4528_v42 = vld [vmem:[#allocation5 + $0x5d0] ss:$20 sps:$4 sm:$0xff]  }
 0x13b   : > { %2223 = vmatprep.subr.bf16.mxu0 %v4428_v6  ;;  %2210 = vmatprep.mubr.bf16.mxu1 %v4795_v7  ;;  %v767_v43 = vadd.f32 %v766_v13, %v547_v37  ;;  %v4491_v6 = vld [vmem:[#allocation5 + $0x1c4] ss:$20 sps:$4 sm:$0xff]  }
 0x13c   : > { %v4099_v14 = vpop.f32.mrf.mxu0  ;;  %v4495_v13 = vld [vmem:[#allocation5 + $0x198] ss:$20 sps:$4 sm:$0xff]  }
 0x13d   : > { %2181 = vmatpush1.bf16.msra.mxu1 %v4423_v9  ;;  %2224 = vmatpush1.bf16.msra.mxu0 %v4426_v10  ;;  %v779_v31 = vmax.f32 %v767_v43, 0.0  ;;  %v4489_v9 = vld [vmem:[#allocation5 + $0x1c0] ss:$20 sps:$4 sm:$0xff]   ;;  %v4498_v14 = vld [vmem:[#allocation5 + $0x2d8] ss:$20 sps:$4 sm:$0xff]  }
 0x13e   : > { %2182 = vmatprep.subr.bf16.mxu1 %v4431_v11  ;;  %2225 = vmatprep.subr.bf16.mxu0 %v4434_v12  ;;  %v4492_v10 = vld [vmem:[#allocation5 + $0x300] ss:$20 sps:$4 sm:$0xff]   ;;  %v4497_v11 = vld [vmem:[#allocation5 + $0x19c] ss:$20 sps:$4 sm:$0xff]   ;;  %v4519_v37 = vld [vmem:[#allocation5 + $0x4b8] ss:$20 sps:$4 sm:$0xff]  }
 0x13f   : > { %v5060_v53 = vpack.c.bf16 %v779_v31, %v774_v48  ;;  %v4500_v12 = vld [vmem:[#allocation5 + $0x2dc] ss:$20 sps:$4 sm:$0xff]   ;;  %v4533_v43 = vld [vmem:[#allocation5 + $0x46c] ss:$20 sps:$4 sm:$0xff]   ;;  %v4542_v48 = vld [vmem:[#allocation5 + $0x584] ss:$20 sps:$4 sm:$0xff]  }
 0x140   : > { %v4537_v31 = vld [vmem:[#allocation5 + $0x440] ss:$20 sps:$4 sm:$0xff]  }
 0x141   : > { %2183 = vmatpush1.bf16.msra.mxu1 %v4429_v15  ;;  %2226 = vmatpush1.bf16.msra.mxu0 %v4432_v16  ;;  %v4503_v15 = vld [vmem:[#allocation5 + $0x174] ss:$20 sps:$4 sm:$0xff]  }
 0x142   : > { %2184 = vmatprep.subr.bf16.mxu1 %v4437_v17  ;;  %2227 = vmatprep.subr.bf16.mxu0 %v4440_v18  ;;  %v4506_v16 = vld [vmem:[#allocation5 + $0x2b4] ss:$20 sps:$4 sm:$0xff]   ;;  %v4501_v17 = vld [vmem:[#allocation5 + $0x170] ss:$20 sps:$4 sm:$0xff]  }
 0x143   : > { %v4504_v18 = vld [vmem:[#allocation5 + $0x2b0] ss:$20 sps:$4 sm:$0xff]  }
 0x145   : > { %2185 = vmatpush1.bf16.msra.mxu1 %v4435_v19  ;;  %2228 = vmatpush1.bf16.msra.mxu0 %v4438_v21  ;;  %v4509_v19 = vld [vmem:[#allocation5 + $0x14c] ss:$20 sps:$4 sm:$0xff]  }
 0x146   : > { %2186 = vmatprep.subr.bf16.mxu1 %v4443_v22  ;;  %2229 = vmatprep.subr.bf16.mxu0 %v4446_v23  ;;  %v4512_v21 = vld [vmem:[#allocation5 + $0x28c] ss:$20 sps:$4 sm:$0xff]   ;;  %v4507_v22 = vld [vmem:[#allocation5 + $0x148] ss:$20 sps:$4 sm:$0xff]  }
 0x147   : > { %v4510_v23 = vld [vmem:[#allocation5 + $0x288] ss:$20 sps:$4 sm:$0xff]  }
 0x149   : > { %2187 = vmatpush1.bf16.msra.mxu1 %v4441_v24  ;;  %2230 = vmatpush1.bf16.msra.mxu0 %v4444_v25  ;;  %v4515_v24 = vld [vmem:[#allocation5 + $0x4e4] ss:$20 sps:$4 sm:$0xff]  }
 0x14a   : > { %2188 = vmatprep.subr.bf16.mxu1 %v4449_v27  ;;  %2231 = vmatprep.subr.bf16.mxu0 %v4452_v34  ;;  %v4518_v25 = vld [vmem:[#allocation5 + $0x624] ss:$20 sps:$4 sm:$0xff]   ;;  %v4513_v27 = vld [vmem:[#allocation5 + $0x4e0] ss:$20 sps:$4 sm:$0xff]  }
 0x14b   : > { %v4516_v34 = vld [vmem:[#allocation5 + $0x620] ss:$20 sps:$4 sm:$0xff]  }
 0x14d   : > { %2189 = vmatpush1.bf16.msra.mxu1 %v4447_v35  ;;  %2232 = vmatpush1.bf16.msra.mxu0 %v4450_v36  ;;  %v4521_v35 = vld [vmem:[#allocation5 + $0x4bc] ss:$20 sps:$4 sm:$0xff]  }
 0x14e   : > { %2190 = vmatprep.subr.bf16.mxu1 %v4455_v38  ;;  %2233 = vmatprep.subr.bf16.mxu0 %v4458_v39  ;;  %v4524_v36 = vld [vmem:[#allocation5 + $0x5fc] ss:$20 sps:$4 sm:$0xff]   ;;  %v4522_v38 = vld [vmem:[#allocation5 + $0x5f8] ss:$20 sps:$4 sm:$0xff]   ;;  %v4527_v39 = vld [vmem:[#allocation5 + $0x494] ss:$20 sps:$4 sm:$0xff]  }
 0x151   : > { %2191 = vmatpush1.bf16.msra.mxu1 %v4453_v40  ;;  %2234 = vmatpush1.bf16.msra.mxu0 %v4456_v41  ;;  %v4530_v40 = vld [vmem:[#allocation5 + $0x5d4] ss:$20 sps:$4 sm:$0xff]   ;;  %v4525_v41 = vld [vmem:[#allocation5 + $0x490] ss:$20 sps:$4 sm:$0xff]  }
 0x152   : > { %2192 = vmatprep.subr.bf16.mxu1 %v4461_v44  ;;  %2235 = vmatprep.subr.bf16.mxu0 %v4464_v45  ;;  %v4536_v44 = vld [vmem:[#allocation5 + $0x5ac] ss:$20 sps:$4 sm:$0xff]   ;;  %v4531_v45 = vld [vmem:[#allocation5 + $0x468] ss:$20 sps:$4 sm:$0xff]  }
 0x155   : > { %2193 = vmatpush1.bf16.msra.mxu1 %v4459_v46  ;;  %2236 = vmatpush1.bf16.msra.mxu0 %v4462_v47  ;;  %v4534_v46 = vld [vmem:[#allocation5 + $0x5a8] ss:$20 sps:$4 sm:$0xff]   ;;  %v4539_v47 = vld [vmem:[#allocation5 + $0x444] ss:$20 sps:$4 sm:$0xff]  }
 0x156   : > { %2237 = vmatprep.subr.bf16.mxu0 %v4467_v49  ;;  %2264 = vmatprep.subr.bf16.mxu1 %v4470_v50  ;;  %v4545_v49 = vld [vmem:[#allocation5 + $0x41c] ss:$20 sps:$4 sm:$0xff]  }
 0x157   : > { %v4548_v50 = vld [vmem:[#allocation5 + $0x55c] ss:$20 sps:$4 sm:$0xff]  }
 0x158   : > { %2211 = vmatmul.mubr.bf16.vlgmr.msra.gmra.mxu1 %v5060_v53 }
 0x159   : > { %2238 = vmatpush2.bf16.msra.mxu0 %v4465_v51  ;;  %2265 = vmatpush1.bf16.msra.mxu1 %v4468_v52  ;;  %v4543_v51 = vld [vmem:[#allocation5 + $0x418] ss:$20 sps:$4 sm:$0xff]  }
 0x15a   : > { %2296 = vmatprep.mubr.bf16.mxu1 %v5046_v0  ;;  %2239 = vmatprep.subr.bf16.mxu0 %v4473_v54  ;;  %v4546_v52 = vld [vmem:[#allocation5 + $0x558] ss:$20 sps:$4 sm:$0xff]   ;;  %v4551_v54 = vld [vmem:[#allocation5 + $0x3f4] ss:$20 sps:$4 sm:$0xff]  }
 0x15b   : > { %2266 = vmatprep.subr.bf16.mxu1 %v4476_v55  ;;  %v4554_v55 = vld [vmem:[#allocation5 + $0x534] ss:$20 sps:$4 sm:$0xff]  }
 0x15d   : > { %2240 = vmatpush2.bf16.msra.mxu0 %v4471_v56  ;;  %2267 = vmatpush1.bf16.msra.mxu1 %v4474_v57  ;;  %v4549_v56 = vld [vmem:[#allocation5 + $0x3f0] ss:$20 sps:$4 sm:$0xff]  }
 0x15e   : > { %2241 = vmatprep.subr.bf16.mxu0 %v4479_v58  ;;  %2268 = vmatprep.subr.bf16.mxu1 %v4482_v59  ;;  %v4552_v57 = vld [vmem:[#allocation5 + $0x530] ss:$20 sps:$4 sm:$0xff]   ;;  %v4557_v58 = vld [vmem:[#allocation5 + $0x3cc] ss:$20 sps:$4 sm:$0xff]  }
 0x15f   : > { %v4560_v59 = vld [vmem:[#allocation5 + $0x50c] ss:$20 sps:$4 sm:$0xff]  }
 0x161   : > { %2242 = vmatpush2.bf16.msra.mxu0 %v4477_v60  ;;  %2269 = vmatpush1.bf16.msra.mxu1 %v4480_v61  ;;  %v4555_v60 = vld [vmem:[#allocation5 + $0x3c8] ss:$20 sps:$4 sm:$0xff]  }
 0x162   : > { %2243 = vmatprep.subr.bf16.mxu0 %v4485_v1  ;;  %2270 = vmatprep.subr.bf16.mxu1 %v4488_v2  ;;  %v4558_v61 = vld [vmem:[#allocation5 + $0x508] ss:$20 sps:$4 sm:$0xff]  }
 0x163   : > { %v4561_v1 = vld [vmem:[#allocation5 + $0x268] ss:$20 sps:$4 sm:$0xff]  }
 0x164   : > { %v4562_v2 = vld [vmem:[#allocation5 + $0x4e8] ss:$20 sps:$4 sm:$0xff]  }
 0x165   : > { %2244 = vmatpush2.bf16.msra.mxu0 %v4483_v4  ;;  %2271 = vmatpush1.bf16.msra.mxu1 %v4486_v5  ;;  %v4563_v4 = vld [vmem:[#allocation5 + $0x128] ss:$20 sps:$4 sm:$0xff]  }
 0x166   : > { %2245 = vmatprep.subr.bf16.mxu0 %v4491_v6  ;;  %2272 = vmatprep.subr.bf16.mxu1 %v4494_v8  ;;  %v4564_v5 = vld [vmem:[#allocation5 + $0x3a8] ss:$20 sps:$4 sm:$0xff]   ;;  %v4565_v6 = vld [vmem:[#allocation5 + $0x240] ss:$20 sps:$4 sm:$0xff]  }
 0x167   : > { %v4566_v8 = vld [vmem:[#allocation5 + $0x4c0] ss:$20 sps:$4 sm:$0xff]  }
 0x169   : > { %2246 = vmatpush2.bf16.msra.mxu0 %v4489_v9  ;;  %2273 = vmatpush1.bf16.msra.mxu1 %v4492_v10  ;;  %v4567_v9 = vld [vmem:[#allocation5 + $0x100] ss:$20 sps:$4 sm:$0xff]  }
 0x16a   : > { %2247 = vmatprep.subr.bf16.mxu0 %v4497_v11  ;;  %2274 = vmatprep.subr.bf16.mxu1 %v4500_v12  ;;  %v4568_v10 = vld [vmem:[#allocation5 + $0x380] ss:$20 sps:$4 sm:$0xff]   ;;  %v4569_v11 = vld [vmem:[#allocation5 + $0x218] ss:$20 sps:$4 sm:$0xff]  }
 0x16b   : > { %v4570_v12 = vld [vmem:[#allocation5 + $0x498] ss:$20 sps:$4 sm:$0xff]  }
 0x16d   : > { %2248 = vmatpush2.bf16.msra.mxu0 %v4495_v13  ;;  %2275 = vmatpush1.bf16.msra.mxu1 %v4498_v14  ;;  %v4571_v13 = vld [vmem:[#allocation5 + $0xd8] ss:$20 sps:$4 sm:$0xff]  }
 0x16e   : > { %2249 = vmatprep.subr.bf16.mxu0 %v4503_v15  ;;  %2276 = vmatprep.subr.bf16.mxu1 %v4506_v16  ;;  %v4572_v14 = vld [vmem:[#allocation5 + $0x358] ss:$20 sps:$4 sm:$0xff]   ;;  %v4573_v15 = vld [vmem:[#allocation5 + $0x1f0] ss:$20 sps:$4 sm:$0xff]  }
 0x16f   : > { %v4574_v16 = vld [vmem:[#allocation5 + $0x470] ss:$20 sps:$4 sm:$0xff]  }
 0x171   : > { %2250 = vmatpush2.bf16.msra.mxu0 %v4501_v17  ;;  %2277 = vmatpush1.bf16.msra.mxu1 %v4504_v18  ;;  %v4575_v17 = vld [vmem:[#allocation5 + $0xb0] ss:$20 sps:$4 sm:$0xff]   ;;  %v4577_v18 = vld [vmem:[#allocation5 + $0x1c8] ss:$20 sps:$4 sm:$0xff]  }
 0x172   : > { %2251 = vmatprep.subr.bf16.mxu0 %v4509_v19  ;;  %2278 = vmatprep.subr.bf16.mxu1 %v4512_v21  ;;  %v4579_v19 = vld [vmem:[#allocation5 + $0x88] ss:$20 sps:$4 sm:$0xff]  }
 0x173   : > { %v4580_v21 = vld [vmem:[#allocation5 + $0x308] ss:$20 sps:$4 sm:$0xff]  }
 0x175   : > { %2252 = vmatpush2.bf16.msra.mxu0 %v4507_v22  ;;  %2279 = vmatpush1.bf16.msra.mxu1 %v4510_v23  ;;  %v4581_v22 = vld [vmem:[#allocation5 + $0x1a0] ss:$20 sps:$4 sm:$0xff]  }
 0x176   : > { %2280 = vmatprep.subr.bf16.mxu1 %v4515_v24  ;;  %2307 = vmatprep.subr.bf16.mxu0 %v4518_v25  ;;  %v4582_v23 = vld [vmem:[#allocation5 + $0x420] ss:$20 sps:$4 sm:$0xff]  }
 0x177   : > { %v4583_v24 = vld [vmem:[#allocation5 + $0x60] ss:$20 sps:$4 sm:$0xff]  }
 0x178   : > { %2254 = vmatmul.mubr.bf16.vlgmr.msra.gmra.mxu0 %v5048_v3  ;;  %v4584_v25 = vld [vmem:[#allocation5 + $0x2e0] ss:$20 sps:$4 sm:$0xff]  }
 0x179   : > { %2281 = vmatpush2.bf16.msra.mxu1 %v4513_v27  ;;  %2308 = vmatpush1.bf16.msra.mxu0 %v4516_v34  ;;  %v4585_v27 = vld [vmem:[#allocation5 + $0x178] ss:$20 sps:$4 sm:$0xff]  }
 0x17a   : > { %2282 = vmatprep.subr.bf16.mxu1 %v4521_v35  ;;  %2309 = vmatprep.subr.bf16.mxu0 %v4524_v36  ;;  %v4586_v34 = vld [vmem:[#allocation5 + $0x3f8] ss:$20 sps:$4 sm:$0xff]  }
 0x17b   : > { %2339 = vmatprep.mubr.bf16.mxu0 %v4795_v7  ;;  %v4540_v7 = vld [vmem:[#allocation5 + $0x580] ss:$20 sps:$4 sm:$0xff]   ;;  %v4587_v35 = vld [vmem:[#allocation5 + $0x38] ss:$20 sps:$4 sm:$0xff]  }
 0x17c   : > { %v4588_v36 = vld [vmem:[#allocation5 + $0x2b8] ss:$20 sps:$4 sm:$0xff]  }
 0x17d   : > { %2283 = vmatpush2.bf16.msra.mxu1 %v4519_v37  ;;  %2310 = vmatpush1.bf16.msra.mxu0 %v4522_v38  ;;  %v4589_v37 = vld [vmem:[#allocation5 + $0x150] ss:$20 sps:$4 sm:$0xff]  }
 0x17e   : > { %2284 = vmatprep.subr.bf16.mxu1 %v4527_v39  ;;  %2311 = vmatprep.subr.bf16.mxu0 %v4530_v40  ;;  %v4590_v38 = vld [vmem:[#allocation5 + $0x3d0] ss:$20 sps:$4 sm:$0xff]  }
 0x17f   : > { %v4591_v39 = vld [vmem:[#allocation5 + $0x10] ss:$20 sps:$4 sm:$0xff]  }
 0x180   : > { %v4592_v40 = vld [vmem:[#allocation5 + $0x290] ss:$20 sps:$4 sm:$0xff]  }
 0x181   : > { %2285 = vmatpush2.bf16.msra.mxu1 %v4525_v41  ;;  %2312 = vmatpush1.bf16.msra.mxu0 %v4528_v42  ;;  %v4601_v41 = vld [vmem:[#allocation6 + $0x78] sm:$0xff]  }
 0x182   : > { %2286 = vmatprep.subr.bf16.mxu1 %v4533_v43  ;;  %2313 = vmatprep.subr.bf16.mxu0 %v4536_v44  ;;  %v4593_v42 = vld [vmem:[#allocation5 + $0x628] ss:$20 sps:$4 sm:$0xff]   ;;  %v4603_v44 = vld [vmem:[#allocation6 + $0x70] sm:$0xff]  }
 0x183   : > { %v4602_v43 = vld [vmem:[#allocation6 + $0x38] sm:$0xff]  }
 0x185   : > { %2287 = vmatpush2.bf16.msra.mxu1 %v4531_v45  ;;  %2314 = vmatpush1.bf16.msra.mxu0 %v4534_v46  ;;  %v4594_v45 = vld [vmem:[#allocation5 + $0x600] ss:$20 sps:$4 sm:$0xff]  }
 0x186   : > { %2288 = vmatprep.subr.bf16.mxu1 %v4539_v47  ;;  %2315 = vmatprep.subr.bf16.mxu0 %v4542_v48  ;;  %v4604_v46 = vld [vmem:[#allocation6 + $0x30] sm:$0xff]   ;;  %v4605_v47 = vld [vmem:[#allocation6 + $0x68] sm:$0xff]  }
 0x187   : > { %v4595_v48 = vld [vmem:[#allocation5 + $0x5d8] ss:$20 sps:$4 sm:$0xff]  }
 0x189   : > { %2289 = vmatpush2.bf16.msra.mxu1 %v4537_v31  ;;  %2316 = vmatpush1.bf16.msra.mxu0 %v4540_v7  ;;  %v4607_v31 = vld [vmem:[#allocation6 + $0x60] sm:$0xff]  }
 0x18a   : > { %2290 = vmatprep.subr.bf16.mxu1 %v4545_v49  ;;  %2317 = vmatprep.subr.bf16.mxu0 %v4548_v50  ;;  %v4608_v7 = vld [vmem:[#allocation6 + $0x20] sm:$0xff]   ;;  %v4609_v49 = vld [vmem:[#allocation6 + $0x58] sm:$0xff]  }
 0x18b   : > { %v4597_v50 = vld [vmem:[#allocation5 + $0x588] ss:$20 sps:$4 sm:$0xff]  }
 0x18d   : > { %2291 = vmatpush2.bf16.msra.mxu1 %v4543_v51  ;;  %2318 = vmatpush1.bf16.msra.mxu0 %v4546_v52  ;;  %v4610_v51 = vld [vmem:[#allocation6 + $0x18] sm:$0xff]   ;;  %v4611_v52 = vld [vmem:[#allocation6 + $0x50] sm:$0xff]  }
 0x18e   : > { %2292 = vmatprep.subr.bf16.mxu1 %v4551_v54  ;;  %2319 = vmatprep.subr.bf16.mxu0 %v4554_v55  ;;  %v4598_v54 = vld [vmem:[#allocation5 + $0x560] ss:$20 sps:$4 sm:$0xff]  }
 0x18f   : > { %v4612_v55 = vld [vmem:[#allocation6 + $0x10] sm:$0xff]  }
 0x191   : > { %2293 = vmatpush2.bf16.msra.mxu1 %v4549_v56  ;;  %2320 = vmatpush1.bf16.msra.mxu0 %v4552_v57  ;;  %v4613_v56 = vld [vmem:[#allocation6 + $0x48] sm:$0xff]  }
 0x192   : > { %2294 = vmatprep.subr.bf16.mxu1 %v4557_v58  ;;  %2321 = vmatprep.subr.bf16.mxu0 %v4560_v59  ;;  %v4599_v57 = vld [vmem:[#allocation5 + $0x538] ss:$20 sps:$4 sm:$0xff]   ;;  %v4615_v59 = vld [vmem:[#allocation6 + $0x40] sm:$0xff]  }
 0x193   : > { %v4614_v58 = vld [vmem:[#allocation6 + $0x8] sm:$0xff]  }
 0x195   : > { %2295 = vmatpush2.bf16.msra.mxu1 %v4555_v60  ;;  %2322 = vmatpush1.bf16.msra.mxu0 %v4558_v61  ;;  %v4600_v60 = vld [vmem:[#allocation5 + $0x510] ss:$20 sps:$4 sm:$0xff]   ;;  %v4617_v61 = vld [vmem:[#allocation6 + $0xf8] sm:$0xff]  }
 0x196   : > { %3934 = vmatprep.subr.bf16.mxu1 %v4561_v1  ;;  %3956 = vmatprep.subr.bf16.mxu0 %v4562_v2  ;;  %v4616_v1 = vld [vmem:[#allocation6] sm:$0xff]   ;;  %v4618_v2 = vld [vmem:[#allocation6 + $0xb8] sm:$0xff]  }
 0x198   : > { %2297 = vmatmul.mubr.bf16.vlgmr.msra.gmra.mxu1 %v5042_v62  ;;  %2340 = vmatmul.mubr.bf16.vlgmr.msra.gmra.mxu0 %v5060_v53 }
 0x199   : > { %3935 = vmatpush3.bf16.msra.mxu1 %v4563_v4  ;;  %2382 = vmatprep.mubr.bf16.mxu1 %v5044_v63  ;;  %v4576_v63 = vld [vmem:[#allocation5 + $0x330] ss:$20 sps:$4 sm:$0xff]  }
 0x19a   : > { %3957 = vmatpush3.bf16.msra.mxu0 %v4564_v5  ;;  %2423 = vmatprep.mubr.bf16.mxu0 %v5046_v0  ;;  %v4578_v0 = vld [vmem:[#allocation5 + $0x448] ss:$20 sps:$4 sm:$0xff]   ;;  %v4619_v4 = vld [vmem:[#allocation6 + $0xf0] sm:$0xff]  }
 0x19b   : > { %3936 = vmatprep.subr.bf16.mxu1 %v4565_v6  ;;  %3958 = vmatprep.subr.bf16.mxu0 %v4566_v8  ;;  %v4620_v5 = vld [vmem:[#allocation6 + $0xb0] sm:$0xff]   ;;  %v4621_v6 = vld [vmem:[#allocation6 + $0xe8] sm:$0xff]  }
 0x19c   : > { %v4622_v8 = vld [vmem:[#allocation6 + $0xa8] sm:$0xff]  }
 0x19d   : > { %3937 = vmatpush3.bf16.msra.mxu1 %v4567_v9  ;;  %v4623_v9 = vld [vmem:[#allocation6 + $0xe0] sm:$0xff]  }
 0x19e   : > { %3959 = vmatpush3.bf16.msra.mxu0 %v4568_v10  ;;  %3938 = vmatprep.subr.bf16.mxu1 %v4569_v11  ;;  %v5087_v10 = vld [vmem:[%s5361_s8 + $0x38] sm:$0xff] }
 0x19f   : > { %3960 = vmatprep.subr.bf16.mxu0 %v4570_v12  ;;  %v4624_v12 = vld [vmem:[#allocation6 + $0xa0] sm:$0xff]  }
 0x1a1   : > { %3939 = vmatpush3.bf16.msra.mxu1 %v4571_v13  ;;  %v2955_v13 = vmul.f32 %v5087_v10, %v5087_v10 }
 0x1a2   : > { %3961 = vmatpush3.bf16.msra.mxu0 %v4572_v14  ;;  %3940 = vmatprep.subr.bf16.mxu1 %v4573_v15  ;;  %v2956_v14 = vstv %s505_s26  ;;  %v2973_v15 = vstv %s3647_s30  ;;  %s496_s26 = scalar_lea.vmem %s5364_s11, %s3644_s22 }
 0x1a3   : > { %3962 = vmatprep.subr.bf16.mxu0 %v4574_v16  ;;  %v5101_v16 = vld [vmem:[%s5361_s8 + $0x28] sm:$0xff] }
 0x1a5   : > { %3941 = vmatpush3.bf16.msra.mxu1 %v4575_v17  ;;  %v4625_v17 = vld [vmem:[#allocation6 + $0xd8] sm:$0xff]  }
 0x1a6   : > { %3963 = vmatpush3.bf16.msra.mxu0 %v4576_v63  ;;  %3942 = vmatprep.subr.bf16.mxu1 %v4577_v18 }
 0x1a7   : > { %3964 = vmatprep.subr.bf16.mxu0 %v4578_v0  ;;  %v2953_v0 = vmul.f32 %v5101_v16, %v5101_v16 }
 0x1a9   : > { %3943 = vmatpush3.bf16.msra.mxu1 %v4579_v19  ;;  %v5108_v19 = vld [vmem:[%s5361_s8 + $0x20] sm:$0xff] }
 0x1aa   : > { %3965 = vmatpush3.bf16.msra.mxu0 %v4580_v21  ;;  %3944 = vmatprep.subr.bf16.mxu1 %v4581_v22 }
 0x1ab   : > { %3966 = vmatprep.subr.bf16.mxu0 %v4582_v23  ;;  %v2962_v23 = vmul.f32 %v2956_v14, %v2953_v0 }
 0x1ad   : > { %3945 = vmatpush3.bf16.msra.mxu1 %v4583_v24  ;;  %v2979_v24 = vmul.f32 %v2973_v15, %v2953_v0 }
 0x1ae   : > { %3967 = vmatpush3.bf16.msra.mxu0 %v4584_v25  ;;  %3946 = vmatprep.subr.bf16.mxu1 %v4585_v27  ;;  %v4626_v25 = vld [vmem:[#allocation6 + $0x98] sm:$0xff]   ;;  %v2964_v27 = vmul.f32 %v2956_v14, %v2955_v13 }
 0x1af   : > { %3968 = vmatprep.subr.bf16.mxu0 %v4586_v34  ;;  %v2981_v34 = vmul.f32 %v2973_v15, %v2955_v13 }
 0x1b1   : > { %3947 = vmatpush3.bf16.msra.mxu1 %v4587_v35  ;;  %v2952_v35 = vmul.f32 %v5108_v19, %v5108_v19 }
 0x1b2   : > { %3969 = vmatpush3.bf16.msra.mxu0 %v4588_v36  ;;  %3948 = vmatprep.subr.bf16.mxu1 %v4589_v37  ;;  %v5115_v36 = vld [vmem:[%s5361_s8 + $0x18] sm:$0xff]  ;;  %v4627_v37 = vld [vmem:[#allocation6 + $0xd0] sm:$0xff]  }
 0x1b3   : > { %3970 = vmatprep.subr.bf16.mxu0 %v4590_v38 }
 0x1b5   : > { %3949 = vmatpush3.bf16.msra.mxu1 %v4591_v39  ;;  %v2970_v39 = vadd.f32 1.0, %v2962_v23 }
 0x1b6   : > { %3971 = vmatpush3.bf16.msra.mxu0 %v4592_v40  ;;  %4100 = vmatprep.subr.bf16.mxu1 %v4796_v20  ;;  %v2987_v40 = vmul.f32 %v2979_v24, %v2953_v0 }
 0x1b7   : > { %3987 = vmatprep.subr.bf16.mxu0 %v4601_v41  ;;  %v2951_v41 = vmul.f32 %v5115_v36, %v5115_v36 }
 0x1b8   : > { %2383 = vmatmul.mubr.bf16.vlgmr.msra.gmra.mxu1 %v5048_v3  ;;  %v4606_v3 = vld [vmem:[#allocation6 + $0x28] sm:$0xff]  }
 0x1b9   : > { %2424 = vmatmul.mubr.bf16.vlgmr.msra.gmra.mxu0 %v5042_v62  ;;  %4101 = vmatpush3.bf16.msra.mxu1 %v4593_v42  ;;  %v4596_v62 = vld [vmem:[#allocation5 + $0x5b0] ss:$20 sps:$4 sm:$0xff]   ;;  %v2961_v42 = vmul.f32 %v2956_v14, %v2952_v35 }
 0x1ba   : > { %4102 = vmatprep.subr.bf16.mxu1 %v4796_v20  ;;  %4116 = vmatprep.mubr.msk.bf16.mxu1 %vm4797_vm2, %v4796_v20 }
 0x1bb   : > { %3988 = vmatpush3.bf16.msra.mxu0 %v4602_v43  ;;  %v2978_v43 = vmul.f32 %v2973_v15, %v2952_v35 }
 0x1bc   : > { %3989 = vmatprep.subr.bf16.mxu0 %v4603_v44  ;;  %v5124_v44 = vld [vmem:[%s5361_s8 + $0x10] sm:$0xff] }
 0x1bd   : > { %4103 = vmatpush3.bf16.msra.mxu1 %v4594_v45  ;;  %v5126_v45 = vadd.f32 %v2987_v40, %v2970_v39 }
 0x1be   : > { %4104 = vmatprep.subr.bf16.mxu1 %v4796_v20 }
 0x1bf   : > { %3990 = vmatpush3.bf16.msra.mxu0 %v4604_v46  ;;  %v2960_v46 = vmul.f32 %v2956_v14, %v2951_v41 }
 0x1c0   : > { %3991 = vmatprep.subr.bf16.mxu0 %v4605_v47  ;;  %v2977_v47 = vmul.f32 %v2973_v15, %v2951_v41 }
 0x1c1   : > { %4105 = vmatpush3.bf16.msra.mxu1 %v4595_v48  ;;  %v4628_v48 = vld [vmem:[#allocation6 + $0x90] sm:$0xff]  }
 0x1c2   : > { %4106 = vmatprep.subr.bf16.mxu1 %v4796_v20 }
 0x1c3   : > { %3992 = vmatpush3.bf16.msra.mxu0 %v4606_v3  ;;  %v2972_v3 = vadd.f32 1.0, %v2964_v27 }
 0x1c4   : > { %3993 = vmatprep.subr.bf16.mxu0 %v4607_v31  ;;  %v2969_v31 = vadd.f32 1.0, %v2961_v42 }
 0x1c5   : > { %4107 = vmatpush3.bf16.msra.mxu1 %v4596_v62  ;;  %v2986_v62 = vmul.f32 %v2978_v43, %v2952_v35 }
 0x1c6   : > { %4108 = vmatprep.subr.bf16.mxu1 %v4796_v20 }
 0x1c7   : > { %3994 = vmatpush3.bf16.msra.mxu0 %v4608_v7  ;;  %v2950_v7 = vmul.f32 %v5124_v44, %v5124_v44 }
 0x1c8   : > { %3995 = vmatprep.subr.bf16.mxu0 %v4609_v49  ;;  %v5133_v49 = vld [vmem:[%s5361_s8 + $0x8] sm:$0xff] }
 0x1c9   : > { %4109 = vmatpush3.bf16.msra.mxu1 %v4597_v50  ;;  %v4629_v50 = vld [vmem:[#allocation6 + $0xc8] sm:$0xff]  }
 0x1ca   : > { %4110 = vmatprep.subr.bf16.mxu1 %v4796_v20 }
 0x1cb   : > { %3996 = vmatpush3.bf16.msra.mxu0 %v4610_v51  ;;  %v2989_v51 = vmul.f32 %v2981_v34, %v2955_v13 }
 0x1cc   : > { %3997 = vmatprep.subr.bf16.mxu0 %v4611_v52  ;;  %v2968_v52 = vadd.f32 1.0, %v2960_v46 }
 0x1cd   : > { %4111 = vmatpush3.bf16.msra.mxu1 %v4598_v54  ;;  %v2985_v54 = vmul.f32 %v2977_v47, %v2951_v41 }
 0x1ce   : > { %4112 = vmatprep.subr.bf16.mxu1 %v4796_v20 }
 0x1cf   : > { %3998 = vmatpush3.bf16.msra.mxu0 %v4612_v55  ;;  %v2949_v55 = vmul.f32 %v5133_v49, %v5133_v49 }
 0x1d0   : > { %3999 = vmatprep.subr.bf16.mxu0 %v4613_v56  ;;  %v5137_v56 = vadd.f32 %v2986_v62, %v2969_v31 }
 0x1d1   : > { %4113 = vmatpush3.bf16.msra.mxu1 %v4599_v57  ;;  %v2959_v57 = vmul.f32 %v2956_v14, %v2950_v7 }
 0x1d2   : > { %4114 = vmatprep.subr.bf16.mxu1 %v4796_v20 }
 0x1d3   : > { %4000 = vmatpush3.bf16.msra.mxu0 %v4614_v58  ;;  %v2976_v58 = vmul.f32 %v2973_v15, %v2950_v7 }
 0x1d4   : > { %4001 = vmatprep.subr.bf16.mxu0 %v4615_v59  ;;  %v5142_v59 = vld [vmem:[%s5361_s8] sm:$0xff] }
 0x1d5   : > { %4115 = vmatpush3.bf16.msra.mxu1 %v4600_v60  ;;  %v5144_v60 = vadd.f32 %v2985_v54, %v2968_v52 }
 0x1d6   : > { %4009 = vmatprep.subr.bf16.mxu1 %v4617_v61  ;;  %v2958_v61 = vmul.f32 %v2956_v14, %v2949_v55 }
 0x1d7   : > { %4002 = vmatpush3.bf16.msra.mxu0 %v4616_v1  ;;  %v2975_v1 = vmul.f32 %v2973_v15, %v2949_v55 }
 0x1d8   : > { %4117 = vmatmul.mubr.bf16.vlgmr.msra.gmra.mxu1 %v5060_v53  ;;  %4120 = vmatprep.subr.bf16.mxu0 %v4796_v20  ;;  %v5092_v53 = vld [vmem:[%s5361_s8 + $0x30] sm:$0xff] }
 0x1d9   : > { %4010 = vmatpush3.bf16.msra.mxu1 %v4618_v2  ;;  %v2954_v11 = vmul.f32 %v5092_v53, %v5092_v53  ;;  %v2948_v2 = vmul.f32 %v5142_v59, %v5142_v59 }
 0x1da   : > { %4011 = vmatprep.subr.bf16.mxu1 %v4619_v4  ;;  %v4630_v4 = vld [vmem:[#allocation6 + $0x88] sm:$0xff]  }
 0x1db   : > { %v2963_v63 = vmul.f32 %v2956_v14, %v2954_v11  ;;  %v2980_v18 = vmul.f32 %v2973_v15, %v2954_v11  ;;  %v2957_v13 = vmul.f32 %v2956_v14, %v2948_v2 }
 0x1dd   : > { %4012 = vmatpush3.bf16.msra.mxu1 %v4620_v5  ;;  %v2971_v21 = vadd.f32 1.0, %v2963_v63  ;;  %v2988_v22 = vmul.f32 %v2980_v18, %v2954_v11  ;;  %v2967_v5 = vadd.f32 1.0, %v2959_v57  ;;  %v2966_v11 = vadd.f32 1.0, %v2958_v61 }
 0x1de   : > { %4013 = vmatprep.subr.bf16.mxu1 %v4621_v6  ;;  %v2984_v6 = vmul.f32 %v2976_v58, %v2950_v7  ;;  %v2974_v63 = vmul.f32 %v2973_v15, %v2948_v2  ;;  %v2965_v0 = vadd.f32 1.0, %v2957_v13  ;;  %v5161_v15 = vld [vmem:[%s5358_s5] sm:$0x1f]  ;;  %v4639_v13 = vld [vmem:[#allocation6 + $0x108] sm:$0xff]  }
 0x1df   : > { %v5117_v38 = vadd.f32 %v2988_v22, %v2971_v21  ;;  %v4632_v21 = vld [vmem:[#allocation6 + $0x80] sm:$0xff]  }
 0x1e0   : > { %v2982_v22 = vmul.f32 %v2974_v63, %v2948_v2  ;;  %v4640_v63 = vld [vmem:[#allocation6 + $0x100] sm:$0xff]  }
 0x1e1   : > { %4014 = vmatpush3.bf16.msra.mxu1 %v4622_v8  ;;  %v4631_v8 = vld [vmem:[#allocation6 + $0xc0] sm:$0xff]  }
 0x1e2   : > { %4015 = vmatprep.subr.bf16.mxu1 %v4623_v9  ;;  %v2997_v9 = vadd.f32 %v2989_v51, %v2972_v3  ;;  %v5155_v24 = vadd.f32 %v2982_v22, %v2965_v0 }
 0x1e4   : > { %v5153_v23 = vmul.f32 %v2997_v9, %v5087_v10  ;;  %v1034_v10 = vrot.slane %v5161_v15, %v534_v32  ;;  %v4636_v9 = vld [vmem:[#allocation6 + $0x120] sm:$0xff]  }
 0x1e5   : > { %4016 = vmatpush3.bf16.msra.mxu1 %v4624_v12  ;;  %v2983_v12 = vmul.f32 %v2975_v1, %v2949_v55 }
 0x1e6   : > { %4017 = vmatprep.subr.bf16.mxu1 %v4625_v17  ;;  %v5148_v17 = vadd.f32 %v2984_v6, %v2967_v5  ;;  %v4634_v6 = vld [vmem:[#allocation6 + $0x130] sm:$0xff]  }
 0x1e7   : > { %v5150_v18 = vadd.f32 %v2983_v12, %v2966_v11  ;;  %v4637_v11 = vld [vmem:[#allocation6 + $0x118] sm:$0xff]   ;;  %v4638_v12 = vld [vmem:[#allocation6 + $0x110] sm:$0xff]  }
 0x1e9   : > { %4018 = vmatpush3.bf16.msra.mxu1 %v4626_v25 }
 0x1ea   : > { %4019 = vmatprep.subr.bf16.mxu1 %v4627_v37  ;;  %v1030_v37 = vrot.slane %v5161_v15, %v530_v33 }
 0x1ed   : > { %4020 = vmatpush3.bf16.msra.mxu1 %v4628_v48 }
 0x1ee   : > { %4021 = vmatprep.subr.bf16.mxu1 %v4629_v50 }
 0x1f1   : > { %4022 = vmatpush3.bf16.msra.mxu1 %v4630_v4  ;;  %v4633_v4 = vld [vmem:[#allocation6 + $0x138] sm:$0xff]  }
 0x1f2   : > { %4023 = vmatprep.subr.bf16.mxu1 %v4631_v8  ;;  %v4635_v8 = vld [vmem:[#allocation6 + $0x128] sm:$0xff]  }
 0x1f5   : > { %4024 = vmatpush3.bf16.msra.mxu1 %v4632_v21 }
 0x1f6   : > { %4140 = vmatprep.subr.mxu1 %v5153_v23 }
 0x1f8   : > { %v2126_v25 = vpop.f32.mrf.mxu1  ;;  %v2169_v27 = vpop.f32.mrf.mxu0 }
 0x1f9   : > { %v2127_v43 = vadd.f32 %v2126_v25, %v1030_v37  ;;  %v1042_v25 = vrot.slane %v5161_v15, %v542_v30 }
 0x1fa   : > { %v2128_v14 = vpop.f32.mrf.mxu1  ;;  %v2171_v35 = vpop.f32.mrf.mxu0 }
 0x1fb   : > { %v2129_v41 = vadd.f32 %v2128_v14, %v1034_v10  ;;  %v2170_v7 = vadd.f32 %v2169_v27, %v2127_v43  ;;  %v1038_v14 = vrot.slane %v5161_v15, %v538_v29 }
 0x1fc   : > { %v2130_v34 = vpop.f32.mrf.mxu1  ;;  %v2173_v40 = vpop.f32.mrf.mxu0 }
 0x1fd   : > { %v2131_v42 = vadd.f32 %v2130_v34, %v1030_v37  ;;  %v2172_v31 = vadd.f32 %v2171_v35, %v2129_v41 }
 0x1fe   : > { %v2132_v39 = vpop.f32.mrf.mxu1  ;;  %v2175_v48 = vpop.f32.mrf.mxu0 }
 0x1ff   : > { %v2133_v47 = vadd.f32 %v2132_v39, %v1034_v10  ;;  %v2174_v62 = vadd.f32 %v2173_v40, %v2131_v42 }
 0x201   : > { %v2176_v51 = vadd.f32 %v2175_v48, %v2133_v47 }
 0x218   : > { %v2212_v46 = vpop.f32.mrf.mxu1 }
 0x219   : > { %v2213_v54 = vadd.f32 %v2212_v46, %v2170_v7 }
 0x21a   : > { %v2214_v3 = vpop.f32.mrf.mxu1 }
 0x21b   : > { %v2215_v52 = vadd.f32 %v2214_v3, %v2172_v31  ;;  %v2473_v1 = vmax.f32 %v2213_v54, 0.0 }
 0x21c   : > { %v2216_v50 = vpop.f32.mrf.mxu1 }
 0x21d   : > { %v2217_v32 = vadd.f32 %v2216_v50, %v2174_v62  ;;  %v2474_v58 = vmax.f32 %v2215_v52, 0.0 }
 0x21e   : > { %v2218_v55 = vpop.f32.mrf.mxu1 }
 0x21f   : > { %v2219_v57 = vadd.f32 %v2218_v55, %v2176_v51  ;;  %v2478_v33 = vmax.f32 %v2217_v32, 0.0 }
 0x221   : > { %v2479_v61 = vmax.f32 %v2219_v57, 0.0  ;;  %v2483_v5 = vpack.c.bf16 %v2478_v33, %v2473_v1  ;;  %v5187_v33 = vmul.f32 %v5117_v38, %v5092_v53  ;;  %v5198_v1 = vmul.f32 %v5137_v56, %v5108_v19  ;;  %v3007_v38 = vld [vmem:[#allocation8 + $0x8] sm:$0xff] }
 0x222   : > { %v5204_v53 = vmul.f32 %v5144_v60, %v5115_v36  ;;  %v5216_v19 = vmul.f32 %v5150_v18, %v5133_v49  ;;  %v5222_v36 = vmul.f32 %v5155_v24, %v5142_v59  ;;  %v3010_v49 = vld [vmem:[#allocation8 + $0x20] sm:$0xff]  ;;  %v3011_v56 = vld [vmem:[#allocation8 + $0x28] sm:$0xff]  ;;  %v3012_v59 = vld [vmem:[#allocation8 + $0x30] sm:$0xff] }
 0x223   : > { %v2484_v2 = vpack.c.bf16 %v2479_v61, %v2474_v58  ;;  %v3006_v58 = vld [vmem:[#allocation8] sm:$0xff]  ;;  %v5191_v61 = vmul.f32 %v5126_v45, %v5101_v16  ;;  %v5210_v16 = vmul.f32 %v5148_v17, %v5124_v44  ;;  %v3008_v44 = vld [vmem:[#allocation8 + $0x10] sm:$0xff]  ;;  %v3009_v45 = vld [vmem:[#allocation8 + $0x18] sm:$0xff] }
 0x224   : > { %v3013_v60 = vld [vmem:[#allocation8 + $0x38] sm:$0xff] }
 0x225   : > { %2847 = vmatprep.mubr.bf16.mxu0 %v2484_v2 }
 0x226   : > { %2848 = vmatmul.mubr.bf16.vlgmr.msra.gmra.mxu0 %v2483_v5 }
 0x227   : > { %4121 = vmatpush3.bf16.msra.mxu0 %v4633_v4  ;;  %4136 = vmatprep.mubr.msk.bf16.mxu0 %vm4797_vm2, %v4796_v20 }
 0x228   : > { %4122 = vmatprep.subr.bf16.mxu0 %v4796_v20 }
 0x22b   : > { %4123 = vmatpush3.bf16.msra.mxu0 %v4634_v6  ;;  %v1046_v6 = vrot.slane %v5161_v15, %v546_v26  ;;  %v3144_v26 = vld [vmem:[#allocation9] sm:$0xff]  ;;  %v3146_v15 = vld [vmem:[#allocation9 + $0x10] sm:$0xff] }
 0x22c   : > { %4124 = vmatprep.subr.bf16.mxu0 %v4796_v20 }
 0x22f   : > { %4125 = vmatpush3.bf16.msra.mxu0 %v4635_v8 }
 0x230   : > { %4126 = vmatprep.subr.bf16.mxu0 %v4796_v20 }
 0x233   : > { %4127 = vmatpush3.bf16.msra.mxu0 %v4636_v9 }
 0x234   : > { %4128 = vmatprep.subr.bf16.mxu0 %v4796_v20 }
 0x237   : > { %4129 = vmatpush3.bf16.msra.mxu0 %v4637_v11 }
 0x238   : > { %4130 = vmatprep.subr.bf16.mxu0 %v4796_v20  ;;  %v2255_v0 = vpop.f32.mrf.mxu0 }
 0x239   : > { %v2256_v37 = vadd.f32 %v2255_v0, %v1038_v14 }
 0x23a   : > { %v2257_v21 = vpop.f32.mrf.mxu0 }
 0x23b   : > { %4131 = vmatpush3.bf16.msra.mxu0 %v4638_v12  ;;  %v2258_v10 = vadd.f32 %v2257_v21, %v1042_v25 }
 0x23c   : > { %4132 = vmatprep.subr.bf16.mxu0 %v4796_v20  ;;  %v2259_v22 = vpop.f32.mrf.mxu0 }
 0x23d   : > { %v2260_v40 = vadd.f32 %v2259_v22, %v1038_v14 }
 0x23e   : > { %v2261_v27 = vpop.f32.mrf.mxu0 }
 0x23f   : > { %4133 = vmatpush3.bf16.msra.mxu0 %v4639_v13  ;;  %v2262_v47 = vadd.f32 %v2261_v27, %v1042_v25 }
 0x240   : > { %4134 = vmatprep.subr.bf16.mxu0 %v4796_v20 }
 0x243   : > { %4135 = vmatpush3.bf16.msra.mxu0 %v4640_v63 }
 0x244   : > { %4168 = vmatprep.subr.mxu0 %v5153_v23 }
 0x258   : > { %v2298_v34 = vpop.f32.mrf.mxu1  ;;  %v2341_v35 = vpop.f32.mrf.mxu0 }
 0x259   : > { %v2299_v42 = vadd.f32 %v2298_v34, %v2256_v37 }
 0x25a   : > { %v2300_v20 = vpop.f32.mrf.mxu1  ;;  %v2343_v39 = vpop.f32.mrf.mxu0 }
 0x25b   : > { %v2301_v41 = vadd.f32 %v2300_v20, %v2258_v10  ;;  %v2342_v7 = vadd.f32 %v2341_v35, %v2299_v42  ;;  %v3149_v42 = vld [vmem:[#allocation9 + $0x28] sm:$0xff] }
 0x25c   : > { %v2302_v43 = vpop.f32.mrf.mxu1  ;;  %v2345_v46 = vpop.f32.mrf.mxu0 }
 0x25d   : > { %v2303_v48 = vadd.f32 %v2302_v43, %v2260_v40  ;;  %v2344_v30 = vadd.f32 %v2343_v39, %v2301_v41  ;;  %v2475_v54 = vmax.f32 %v2342_v7, 0.0  ;;  %v3147_v40 = vld [vmem:[#allocation9 + $0x18] sm:$0xff]  ;;  %v3148_v41 = vld [vmem:[#allocation9 + $0x20] sm:$0xff]  ;;  %v3150_v43 = vld [vmem:[#allocation9 + $0x30] sm:$0xff] }
 0x25e   : > { %v2304_v3 = vpop.f32.mrf.mxu1  ;;  %v2347_v29 = vpop.f32.mrf.mxu0 }
 0x25f   : > { %v2346_v31 = vadd.f32 %v2345_v46, %v2303_v48  ;;  %v2305_v62 = vadd.f32 %v2304_v3, %v2262_v47  ;;  %v2476_v52 = vmax.f32 %v2344_v30, 0.0  ;;  %v3151_v46 = vld [vmem:[#allocation9 + $0x38] sm:$0xff] }
 0x261   : > { %v2348_v50 = vadd.f32 %v2347_v29, %v2305_v62  ;;  %v2480_v51 = vmax.f32 %v2346_v31, 0.0 }
 0x263   : > { %v2481_v32 = vmax.f32 %v2348_v50, 0.0  ;;  %v2485_v57 = vpack.c.bf16 %v2480_v51, %v2475_v54 }
 0x265   : > { %v2486_v55 = vpack.c.bf16 %v2481_v32, %v2476_v52 }
 0x267   : > { %2888 = vmatprep.mubr.bf16.mxu1 %v2486_v55 }
 0x268   : > { %2889 = vmatmul.mubr.bf16.vlgmr.msra.gmra.mxu1 %v2485_v57 }
 0x269   : > { %4141 = vmatpush3.msra.mxu1 %v5153_v23  ;;  %4156 = vmatprep.mubr.msk.f32.mxu1 %vm3014_vm3, %v3006_v58  ;;  %v3871_v58 = vld [vmem:[%s5360_s7] ss:$0 sm:$0xff] }
 0x26a   : > { %4142 = vmatprep.subr.mxu1 %v5187_v33 }
 0x26b   : > { %4143 = vmatpush3.msra.mxu1 %v5187_v33 }
 0x26c   : > { %4144 = vmatprep.subr.mxu1 %v5191_v61 }
 0x26d   : > { %4145 = vmatpush3.msra.mxu1 %v5191_v61 }
 0x26e   : > { %4146 = vmatprep.subr.mxu1 %v5198_v1 }
 0x26f   : > { %4147 = vmatpush3.msra.mxu1 %v5198_v1 }
 0x270   : > { %4148 = vmatprep.subr.mxu1 %v5204_v53 }
 0x271   : > { %4149 = vmatpush3.msra.mxu1 %v5204_v53 }
 0x272   : > { %4150 = vmatprep.subr.mxu1 %v5210_v16 }
 0x273   : > { %4151 = vmatpush3.msra.mxu1 %v5210_v16 }
 0x274   : > { %4152 = vmatprep.subr.mxu1 %v5216_v19 }
 0x275   : > { %4153 = vmatpush3.msra.mxu1 %v5216_v19 }
 0x276   : > { %4154 = vmatprep.subr.mxu1 %v5222_v36 }
 0x277   : > { %4155 = vmatpush3.msra.mxu1 %v5222_v36 }
 0x278   : > { %4157 = vmatmul.mubr.msk.f32.vlgmr.msra.gmra.mxu1 %vm3014_vm3, %v3007_v38  ;;  %v3950_v17 = vpop.f32.mrf.mxu1 }
 0x279   : > { %4159 = vmatprep.mubr.msk.f32.mxu1 %vm3014_vm3, %v3008_v44  ;;  %v3972_v24 = vpop.f32.mrf.mxu0 }
 0x27a   : > { %v3951_v18 = vpop.f32.mrf.mxu1 }
 0x27b   : > { %v3973_v4 = vpop.f32.mrf.mxu0  ;;  %v3952_v8 = vadd.f32 %v3951_v18, %v3950_v17 }
 0x27c   : > { %4160 = vmatmul.mubr.msk.f32.gmra.mxu1 %vm3014_vm3, %v3009_v45  ;;  %v3953_v2 = vpop.f32.mrf.mxu1  ;;  %v3974_v63 = vadd.f32 %v3973_v4, %v3972_v24 }
 0x27d   : > { %4162 = vmatprep.mubr.msk.f32.mxu1 %vm3014_vm3, %v3010_v49  ;;  %v3975_v9 = vpop.f32.mrf.mxu0  ;;  %v2385_v12 = vadd.f32 %v3952_v8, %v1046_v6 }
 0x27e   : > { %v3954_v5 = vpop.f32.mrf.mxu1 }
 0x27f   : > { %v3955_v11 = vadd.f32 %v3954_v5, %v3953_v2  ;;  %v3976_v13 = vpop.f32.mrf.mxu0  ;;  %v2426_v25 = vadd.f32 %v3974_v63, %v2385_v12 }
 0x280   : > { %4163 = vmatmul.mubr.msk.f32.gmra.mxu1 %vm3014_vm3, %v3011_v56  ;;  %v3977_v22 = vadd.f32 %v3976_v13, %v3975_v9 }
 0x281   : > { %4165 = vmatprep.mubr.msk.f32.mxu1 %vm3014_vm3, %v3012_v59  ;;  %v2388_v0 = vadd.f32 %v3955_v11, %v1046_v6 }
 0x283   : > { %v2429_v34 = vadd.f32 %v3977_v22, %v2388_v0 }
 0x284   : > { %4166 = vmatmul.mubr.msk.f32.gmra.mxu1 %vm3014_vm3, %v3013_v60 }
 0x298   : > { %v2466_v21 = vpop.f32.mrf.mxu1 }
 0x299   : > { %v2467_v27 = vadd.f32 %v2466_v21, %v2426_v25 }
 0x29a   : > { %v4118_v14 = vpop.f32.mrf.mxu1 }
 0x29b   : > { %v2477_v20 = vmax.f32 %v2467_v27, 0.0 }
 0x29c   : > { %v2469_v35 = vpop.f32.mrf.mxu1 }
 0x29d   : > { %v2470_v10 = vadd.f32 %v2469_v35, %v2429_v34 }
 0x29e   : > { %v4119_v37 = vpop.f32.mrf.mxu1 }
 0x29f   : > { %v2482_v28 = vmax.f32 %v2470_v10, 0.0 }
 0x2a1   : > { %v2487_v39 = vpack.c.bf16 %v2482_v28, %v2477_v20 }
 0x2a3   : > { %4137 = vmatmul.mubr.bf16.vlgmr.msra.gmra.mxu0 %v2487_v39 }
 0x2a4   : > { %4169 = vmatpush3.msra.mxu0 %v5153_v23  ;;  %4184 = vmatprep.mubr.msk.f32.mxu0 %vm3014_vm3, %v3144_v26  ;;  %v3145_v23 = vld [vmem:[#allocation9 + $0x8] sm:$0xff] }
 0x2a5   : > { %4170 = vmatprep.subr.mxu0 %v5187_v33 }
 0x2a6   : > { %4171 = vmatpush3.msra.mxu0 %v5187_v33 }
 0x2a7   : > { %4172 = vmatprep.subr.mxu0 %v5191_v61 }
 0x2a8   : > { %4173 = vmatpush3.msra.mxu0 %v5191_v61 }
 0x2a9   : > { %4174 = vmatprep.subr.mxu0 %v5198_v1 }
 0x2aa   : > { %4175 = vmatpush3.msra.mxu0 %v5198_v1 }
 0x2ab   : > { %4176 = vmatprep.subr.mxu0 %v5204_v53 }
 0x2ac   : > { %4177 = vmatpush3.msra.mxu0 %v5204_v53 }
 0x2ad   : > { %4178 = vmatprep.subr.mxu0 %v5210_v16 }
 0x2ae   : > { %4179 = vmatpush3.msra.mxu0 %v5210_v16 }
 0x2af   : > { %4180 = vmatprep.subr.mxu0 %v5216_v19 }
 0x2b0   : > { %4181 = vmatpush3.msra.mxu0 %v5216_v19 }
 0x2b1   : > { %4182 = vmatprep.subr.mxu0 %v5222_v36 }
 0x2b2   : > { %4183 = vmatpush3.msra.mxu0 %v5222_v36 }
 0x2b3   : > { %4185 = vmatmul.mubr.msk.f32.vlgmr.msra.gmra.mxu0 %vm3014_vm3, %v3145_v23 }
 0x2b4   : > { %4187 = vmatprep.mubr.msk.f32.mxu0 %vm3014_vm3, %v3146_v15 }
 0x2b7   : > { %4188 = vmatmul.mubr.msk.f32.gmra.mxu0 %vm3014_vm3, %v3147_v40 }
 0x2b8   : > { %4190 = vmatprep.mubr.msk.f32.mxu0 %vm3014_vm3, %v3148_v41 }
 0x2bb   : > { %4191 = vmatmul.mubr.msk.f32.gmra.mxu0 %vm3014_vm3, %v3149_v42 }
 0x2bc   : > { %4193 = vmatprep.mubr.msk.f32.mxu0 %vm3014_vm3, %v3150_v43 }
 0x2bf   : > { %4194 = vmatmul.mubr.msk.f32.gmra.mxu0 %vm3014_vm3, %v3151_v46 }
 0x2e6   : > { %v4003_v54 = vpop.f32.mrf.mxu0 }
 0x2e8   : > { %v4004_v55 = vpop.f32.mrf.mxu0 }
 0x2e9   : > { %v4005_v33 = vadd.f32 %v4004_v55, %v4003_v54 }
 0x2ea   : > { %v4006_v57 = vpop.f32.mrf.mxu0 }
 0x2eb   : > { %v2850_v53 = vadd.f32 %v4005_v33, %v3871_v58 }
 0x2ec   : > { %v4007_v61 = vpop.f32.mrf.mxu0 }
 0x2ed   : > { %v4008_v16 = vadd.f32 %v4007_v61, %v4006_v57 }
 0x2ef   : > { %v2853_v44 = vadd.f32 %v4008_v16, %v3871_v58 }
 0x328   : > { %v4025_v47 = vpop.f32.mrf.mxu1 }
 0x32a   : > { %v4026_v48 = vpop.f32.mrf.mxu1 }
 0x32b   : > { %v4027_v1 = vadd.f32 %v4026_v48, %v4025_v47 }
 0x32c   : > { %v4028_v3 = vpop.f32.mrf.mxu1 }
 0x32d   : > { %v2891_v36 = vadd.f32 %v4027_v1, %v2850_v53 }
 0x32e   : > { %v4029_v30 = vpop.f32.mrf.mxu1 }
 0x32f   : > { %v4030_v19 = vadd.f32 %v4029_v30, %v4028_v3 }
 0x331   : > { %v2894_v56 = vadd.f32 %v4030_v19, %v2853_v44  ;;  %v3462_v19 = vstv %s3649_s13 }
 0x338   : > { %v5262_v31 = vpop.f32.mrf.mxu1 }
 0x33a   : > { %v5264_v62 = vpop.f32.mrf.mxu1 }
 0x33c   : > { %v5266_v7 = vpop.f32.mrf.mxu1 }
 0x33e   : > { %v5268_v29 = vpop.f32.mrf.mxu1 }
 0x340   : > { %v5270_v50 = vpop.f32.mrf.mxu1 }
 0x341   : > { %3348 = vrot.lane.b32.xlu1 %v5270_v50, %s4798_s19 }
 0x342   : > { %v5274_v51 = vpop.f32.mrf.mxu1 }
 0x344   : > { %v5276_v52 = vpop.f32.mrf.mxu1 }
 0x345   : > { %3346 = vrot.lane.b32.xlu1 %v5274_v51, %s4798_s19  ;;  %3352 = vrot.lane.b32.xlu0 %v5276_v52, %s4798_s19 }
 0x346   : > { %v5282_v32 = vpop.f32.mrf.mxu1 }
 0x349   : > { %3342 = vrot.lane.b32.xlu1 %v5268_v29, %s4798_s19  ;;  %3350 = vrot.lane.b32.xlu0 %v5282_v32, %s4798_s19 }
 0x34d   : > { %3338 = vrot.lane.b32.xlu1 %v5264_v62, %s4798_s19  ;;  %3344 = vrot.lane.b32.xlu0 %v5266_v7, %s4798_s19 }
 0x351   : > { %3340 = vrot.lane.b32.xlu0 %v5262_v31, %s4798_s19 }
 0x363   : > { %v2931_v38 = vpop.f32.mrf.mxu0 }
 0x364   : > { %v2932_v45 = vadd.f32 %v2931_v38, %v2891_v36 }
 0x365   : > { %v4138_v49 = vpop.f32.mrf.mxu0 }
 0x366   : > { %2938 = vst [vmem:[%s502_s14] sm:$0xff] %v2932_v45  ;;  %4228 = vmatprep.mubr.f32.mxu1 %v2932_v45 }
 0x367   : > { %v2934_v59 = vpop.f32.mrf.mxu0 }
 0x368   : > { %v5303_v60 = vadd.f32 %v2934_v59, %v2894_v56 }
 0x369   : > { %v4139_v17 = vpop.f32.mrf.mxu0 }
 0x36a   : > { %2939 = vst [vmem:[%s502_s14 + $0x8] sm:$0xff] %v5303_v60 }
 0x373   : > { %v4186_v18 = vpop.f32.mrf.mxu0 }
 0x374   : > { %v3323_v23 = vsub.f32 0.0, %v4186_v18 }
 0x375   : > { %v3242_v24 = vpop.f32.mrf.mxu0 }
 0x376   : > { %v3322_v41 = vsub.f32 0.0, %v3242_v24 }
 0x377   : > { %v4189_v2 = vpop.f32.mrf.mxu0 }
 0x378   : > { %v3325_v37 = vsub.f32 0.0, %v4189_v2 }
 0x379   : > { %v3252_v4 = vpop.f32.mrf.mxu0 }
 0x37a   : > { %v3324_v28 = vsub.f32 0.0, %v3252_v4 }
 0x37b   : > { %v4192_v5 = vpop.f32.mrf.mxu0 }
 0x37c   : > { %v3327_v25 = vsub.f32 0.0, %v4192_v5 }
 0x37d   : > { %v3262_v6 = vpop.f32.mrf.mxu0 }
 0x37e   : > { %v3326_v27 = vsub.f32 0.0, %v3262_v6 }
 0x37f   : > { %v4195_v8 = vpop.f32.mrf.mxu0 }
 0x380   : > { %3303 = vrot.lane.b32.xlu0 %v4195_v8, %s4798_s19  ;;  %v3329_v12 = vsub.f32 0.0, %v4195_v8 }
 0x381   : > { %v3272_v9 = vpop.f32.mrf.mxu0 }
 0x382   : > { %3301 = vrot.lane.b32.xlu1 %v3272_v9, %s4798_s19  ;;  %v3328_v21 = vsub.f32 0.0, %v3272_v9 }
 0x384   : > { %3299 = vrot.lane.b32.xlu0 %v4192_v5, %s4798_s19 }
 0x386   : > { %3297 = vrot.lane.b32.xlu1 %v3262_v6, %s4798_s19 }
 0x388   : > { %3295 = vrot.lane.b32.xlu0 %v4189_v2, %s4798_s19 }
 0x38a   : > { %3293 = vrot.lane.b32.xlu1 %v3252_v4, %s4798_s19 }
 0x38c   : > { %3291 = vrot.lane.b32.xlu0 %v4186_v18, %s4798_s19 }
 0x38e   : > { %3289 = vrot.lane.b32.xlu1 %v3242_v24, %s4798_s19 }
 0x3b3   : > { %v3349_v11 = vpop.permute.xlu1 %3348 }
 0x3b4   : > { %v3367_v34 = vsel %vm3313_vm4, %v3327_v25, %v3349_v11 }
 0x3b7   : > { %v3353_v13 = vpop.permute.xlu0 %3352  ;;  %v3347_v0 = vpop.permute.xlu1 %3346 }
 0x3b8   : > { %v3369_v63 = vsel %vm3313_vm4, %v3329_v12, %v3353_v13  ;;  %v3366_v20 = vsel %vm3313_vm4, %v3326_v27, %v3347_v0 }
 0x3b9   : > { %4196 = vmatprep.subr.mxu1 %v3369_v63 }
 0x3ba   : > { %4197 = vmatpush3.msra.mxu1 %v3369_v63 }
 0x3bb   : > { %v3351_v22 = vpop.permute.xlu0 %3350  ;;  %v3343_v35 = vpop.permute.xlu1 %3342 }
 0x3bc   : > { %v3368_v14 = vsel %vm3313_vm4, %v3328_v21, %v3351_v22  ;;  %v3364_v15 = vsel %vm3313_vm4, %v3324_v28, %v3343_v35 }
 0x3bd   : > { %4198 = vmatprep.subr.mxu1 %v3368_v14 }
 0x3be   : > { %4199 = vmatpush3.msra.mxu1 %v3368_v14 }
 0x3bf   : > { %v3345_v10 = vpop.permute.xlu0 %3344  ;;  %4200 = vmatprep.subr.mxu1 %v3367_v34  ;;  %v3339_v40 = vpop.permute.xlu1 %3338 }
 0x3c0   : > { %4201 = vmatpush3.msra.mxu1 %v3367_v34  ;;  %v3365_v39 = vsel %vm3313_vm4, %v3325_v37, %v3345_v10  ;;  %v3362_v43 = vsel %vm3313_vm4, %v3322_v41, %v3339_v40 }
 0x3c1   : > { %4202 = vmatprep.subr.mxu1 %v3366_v20 }
 0x3c2   : > { %4203 = vmatpush3.msra.mxu1 %v3366_v20 }
 0x3c3   : > { %v3341_v26 = vpop.permute.xlu0 %3340  ;;  %4204 = vmatprep.subr.mxu1 %v3365_v39 }
 0x3c4   : > { %4205 = vmatpush3.msra.mxu1 %v3365_v39  ;;  %v3363_v42 = vsel %vm3313_vm4, %v3323_v23, %v3341_v26 }
 0x3c5   : > { %4206 = vmatprep.subr.mxu1 %v3364_v15 }
 0x3c6   : > { %4207 = vmatpush3.msra.mxu1 %v3364_v15 }
 0x3c7   : > { %4208 = vmatprep.subr.mxu1 %v3363_v42 }
 0x3c8   : > { %4209 = vmatpush3.msra.mxu1 %v3363_v42 }
 0x3c9   : > { %4210 = vmatprep.subr.mxu1 %v3362_v43 }
 0x3ca   : > { %4211 = vmatpush3.msra.mxu1 %v3362_v43 }
 0x3f2   : > { %v3304_v46 = vpop.permute.xlu0 %3303 }
 0x3f3   : > { %v3321_v47 = vsel %vm3313_vm4, %v5276_v52, %v3304_v46 }
 0x3f4   : > { %v3302_v48 = vpop.permute.xlu1 %3301  ;;  %4212 = vmatprep.subr.mxu1 %v3321_v47 }
 0x3f5   : > { %4213 = vmatpush3.msra.mxu1 %v3321_v47  ;;  %v3320_v3 = vsel %vm3313_vm4, %v5282_v32, %v3302_v48 }
 0x3f6   : > { %v3300_v30 = vpop.permute.xlu0 %3299  ;;  %4214 = vmatprep.subr.mxu1 %v3320_v3 }
 0x3f7   : > { %4215 = vmatpush3.msra.mxu1 %v3320_v3  ;;  %v3319_v54 = vsel %vm3313_vm4, %v5270_v50, %v3300_v30 }
 0x3f8   : > { %v3298_v55 = vpop.permute.xlu1 %3297  ;;  %4216 = vmatprep.subr.mxu1 %v3319_v54 }
 0x3f9   : > { %4217 = vmatpush3.msra.mxu1 %v3319_v54  ;;  %v3318_v57 = vsel %vm3313_vm4, %v5274_v51, %v3298_v55 }
 0x3fa   : > { %v3296_v33 = vpop.permute.xlu0 %3295  ;;  %4218 = vmatprep.subr.mxu1 %v3318_v57 }
 0x3fb   : > { %4219 = vmatpush3.msra.mxu1 %v3318_v57  ;;  %v3317_v52 = vsel %vm3313_vm4, %v5266_v7, %v3296_v33 }
 0x3fc   : > { %v3294_v58 = vpop.permute.xlu1 %3293  ;;  %4220 = vmatprep.subr.mxu1 %v3317_v52 }
 0x3fd   : > { %4221 = vmatpush3.msra.mxu1 %v3317_v52  ;;  %v3316_v32 = vsel %vm3313_vm4, %v5268_v29, %v3294_v58 }
 0x3fe   : > { %v3292_v61 = vpop.permute.xlu0 %3291  ;;  %4222 = vmatprep.subr.mxu1 %v3316_v32 }
 0x3ff   : > { %4223 = vmatpush3.msra.mxu1 %v3316_v32  ;;  %v3315_v50 = vsel %vm3313_vm4, %v5262_v31, %v3292_v61  ;;  %v3457_v31 = vstv %s3648_s23 }
 0x400   : > { %v3290_v1 = vpop.permute.xlu1 %3289  ;;  %4224 = vmatprep.subr.mxu1 %v3315_v50 }
 0x401   : > { %4225 = vmatpush3.msra.mxu1 %v3315_v50  ;;  %v3314_v51 = vsel %vm3313_vm4, %v5264_v62, %v3290_v1 }
 0x402   : > { %4226 = vmatprep.subr.mxu1 %v3314_v51 }
 0x403   : > { %4227 = vmatpush3.msra.mxu1 %v3314_v51 }
 0x404   : > { %4229 = vmatmul.mubr.f32.vlgmr.msra.gmra.mxu1 %v5303_v60 }
 0x4c4   : > { %v4230_v7 = vpop.f32.mrf.mxu1 }
 0x4c5   : > { %v3446_v53 = vmul.f32 %v4230_v7, %v4230_v7 }
 0x4c6   : > { %v3436_v16 = vpop.f32.mrf.mxu1 }
 0x4c7   : > { %v3445_v29 = vmul.f32 %v3436_v16, %v3436_v16  ;;  %3451 = vrot.lane.b32.xlu1 %v3446_v53, %s4799_s28 }
 0x4c9   : > { %3449 = vrot.lane.b32.xlu0 %v3445_v29, %s4799_s28 }
 0x539   : > { %v3452_v36 = vpop.permute.xlu1 %3451 }
 0x53a   : > { %v3456_v38 = vadd.f32 %v3452_v36, %v3446_v53 }
 0x53b   : > { %v3450_v44 = vpop.permute.xlu0 %3449 }
 0x53c   : > { %v3459_v45 = vmul.f32 %v3457_v31, %v3456_v38  ;;  %v3464_v62 = vmul.f32 %v3462_v19, %v3456_v38  ;;  %v3455_v49 = vadd.f32 %v3450_v44, %v3445_v29 }
 0x53e   : > { %v3461_v56 = vadd.f32 1.0, %v3459_v45  ;;  %v3466_v59 = vmul.f32 %v3464_v62, %v3456_v38  ;;  %v3458_v60 = vmul.f32 %v3457_v31, %v3455_v49  ;;  %v3463_v17 = vmul.f32 %v3462_v19, %v3455_v49 }
 0x540   : > { %v3460_v18 = vadd.f32 1.0, %v3458_v60  ;;  %v3465_v24 = vmul.f32 %v3463_v17, %v3455_v49  ;;  %v3468_v2 = vadd.f32 %v3466_v59, %v3461_v56 }
 0x542   : > { %3473 = vrot.lane.b32.xlu1 %v3468_v2, %s4798_s19  ;;  %v3467_v4 = vadd.f32 %v3465_v24, %v3460_v18 }
 0x544   : > { %3471 = vrot.lane.b32.xlu0 %v3467_v4, %s4798_s19 }
 0x5b4   : > { %v3474_v5 = vpop.permute.xlu1 %3473 }
 0x5b5   : > { %v3478_v6 = vsel %vm3313_vm4, %v3468_v2, %v3474_v5 }
 0x5b6   : > { %v3472_v8 = vpop.permute.xlu0 %3471  ;;  %v3480_v12 = vmul.f32 %v4230_v7, %v3478_v6 }
 0x5b7   : > { %v3477_v9 = vsel %vm3313_vm4, %v3467_v4, %v3472_v8 }
 0x5b8   : > { %v3479_v11 = vmul.f32 %v3477_v9, %v3436_v16  ;;  %3482 = vst.msk [vmem:[%s496_s26 + $0x8] sm:$0xff] %vm623_vm1, %v3480_v12 }
 0x5ba   : > { %3481 = vst.msk [vmem:[%s496_s26] sm:$0xff] %vm623_vm1, %v3479_v11 }
 0x5bb PF: > { %s27_s21 = sadd.s32 1, %s4782_s21  }
 0x5bc   : > { %p24_p5 = scmp.ge.s32.totalorder %s27_s21, 4  }
 0x5be   :  { %26 = sbr.rel (!%p24_p5) target bundleno = 4 (0x4), region = 128 }
 0x5c3   :  { %3522 = vsyncpa [#allocation3], 1 }
 0x5c4   :  { %3524 = vsyncpa [#allocation3 + $0x1], 1 }
 0x5c5   :  { %3525 = vsyncpa [#allocation7], 1 }
 0x5c6   :  { %3526 = vsyncpa [#allocation10], 1 }
 0x5c7   :  { %3527 = vsyncpa [#allocation4], 1 }
 0x5c8   :  { %3529 = vsyncpa [#allocation4 + $0x1], 1 }

</bundles_post_ra>
